<compile_context>
chip_gen: v7x
topology: tpu7x:2x2x1
jax: 0.10.0
libtpu: 0.0.40
codegen_flags: <defaults>
</compile_context>

<pallas_src>
import numpy as np
import jax
import jax.numpy as jnp
from jax.experimental import pallas as pl
from jax.experimental.pallas import tpu as pltpu

_LANES = 128                     # lane width of the per-step partial-sum row
_SQRT_HALF = float(1.0 / np.sqrt(2.0))


def _make_kernel(wkd_level, pack, width, rows_per_slab, channels, slabs_per_step):
    """Fused J-level in-place 2-D Haar butterfly on (B*H/G, G*W) packed blocks."""
    J, G, W, Hs, C, B = wkd_level, pack, width, rows_per_slab, channels, slabs_per_step

    def kernel(p_ref, t_ref, out_ref):
        # Haar DWT is linear: the whole cascade is run on e = t - p only.
        cur = t_ref[0].astype(jnp.float32) - p_ref[0].astype(jnp.float32)
        R, Wp = cur.shape                                      # (B*Hs, G*W)

        # Hoisted packed-coordinate maps (computed once, reused by all levels).
        pr = jax.lax.broadcasted_iota(jnp.int32, (R, Wp), 0)   # packed row
        pc = jax.lax.broadcasted_iota(jnp.int32, (R, Wp), 1)   # packed column
        chunk = jnp.zeros((R, Wp), jnp.int32)                  # == pc // W (division-free)
        for k in range(1, G):
            chunk = chunk + (pc >= k * W).astype(jnp.int32)
        r_img = G * pr + chunk                                 # image row (exact mod 2**J)
        # image col mod m (m | W) is simply pc & (m - 1); no unpacking needed.

        def butterfly(x, base, dist, axis):
            # Haar pair (p0, p1) at distance `dist` along `axis`:
            #   out[p0] = (x[p0] + x[p1]) / sqrt(2)
            #   out[p1] = (x[p0] - x[p1]) / sqrt(2)
            # TODO(synk): jnp.roll (slice+concat) is used instead of pltpu.roll
            # to keep the shift convention unambiguous; swap in the XLU-native
            # pltpu.roll once its direction is verified on-device.
            fwd = jnp.roll(x, -dist, axis=axis)                # value at coord + dist
            bwd = jnp.roll(x, dist, axis=axis)                 # value at coord - dist
            return jnp.where(base, x + fwd, bwd - x) * _SQRT_HALF

        level_sums = []
        active = None
        for j in range(J):
            s = 1 << j                                         # input LL-grid stride
            m2 = 2 * s
            base_r = (r_img & (m2 - 1)) == 0
            base_c = (pc & (m2 - 1)) == 0

            # column (image-row direction) pass: the partner is `s` image rows
            # away, which after lane-packing lives either s*W lanes away (same
            # packed row) or s//G packed rows away.
            if s < G:
                colv = butterfly(cur, base_r, s * W, axis=1)
            else:
                colv = butterfly(cur, base_r, s // G, axis=0)
            # row (image-col direction) pass: always `s` lanes away.
            rowv = butterfly(colv, base_c, s, axis=1)

            if s == 1:
                cur = rowv
                active = None
            else:
                active = ((r_img & (s - 1)) == 0) & ((pc & (s - 1)) == 0)
                cur = jnp.where(active, rowv, cur)

            # |high-band| partial sum of this level: positions live at this
            # level that are not on the next level's LL grid.
            on_next_ll = base_r & base_c
            high = (jnp.logical_not(on_next_ll) if active is None
                    else active & jnp.logical_not(on_next_ll))
            level_sums.append(jnp.sum(jnp.where(high, jnp.abs(cur), 0.0)))

        # Leaked-index final low-band term: |e_LL| summed over batch sample
        # J-1 only (the module's `pred_l[index]` with the leaked loop variable).
        mJ = 1 << J
        ll_mask = ((r_img & (mJ - 1)) == 0) & ((pc & (mJ - 1)) == 0)
        step = pl.program_id(0)
        row_lo = ((J - 1) * C - step * B) * Hs
        row_hi = (J * C - step * B) * Hs
        samp = (pr >= row_lo) & (pr < row_hi)
        level_sums.append(jnp.sum(jnp.where(ll_mask & samp, jnp.abs(cur), 0.0)))

        # One lane-dense (1, 128) partial-sum row per grid step:
        # lane j (< J) = level-j high-band sum, lane J = final low-band sum.
        lane = jax.lax.broadcasted_iota(jnp.int32, (1, _LANES), 1)
        row = jnp.zeros((1, _LANES), jnp.float32)
        for j, v in enumerate(level_sums):
            row = jnp.where(lane == j, v, row)
        out_ref[0] = row

    return kernel


def _pick_pack(h, w):
    """Largest power-of-two row-packing factor G such that (H, W) -> (H/G, G*W)
    (a pure row-major reshape) makes the lane axis >= 256 (or as wide as H allows)."""
    g = 1
    while (2 * g <= h) and (h % (2 * g) == 0) and (g * w < 256):
        g *= 2
    return g


def _num_tensorcores():
    # Megacore awareness for the grid-step picker (v7x has 2 TCs per chip).
    try:
        return max(1, int(getattr(jax.devices()[0], "num_cores", 1)))
    except Exception:
        return 1


def _pick_slabs_per_step(nc, rows_per_slab, lanes, itemsize, num_cores):
    """Largest divisor B of nc whose working set (2 inputs x 2 pipeline buffers
    + ~8 live f32 temporaries/masks) fits well inside the 32 MiB scoped-VMEM
    limit; prefer a B whose step count shards evenly across TensorCores."""
    per_slab = rows_per_slab * lanes
    budget = 24 << 20

    def fits(b):
        data = 2 * 2 * b * per_slab * max(int(itemsize), 4)   # 2 inputs x 2 buffers
        live = 8 * b * per_slab * 4                           # f32 temporaries + masks
        return data + live <= budget

    divisors = [b for b in range(1, nc + 1) if nc % b == 0 and fits(b)] or [1]
    best = max(divisors)
    if num_cores > 1:
        cored = [b for b in divisors if (nc // b) % num_cores == 0]
        if cored:
            best = max(cored)
    return best


def dwt_loss(pred, target, weight=None, loss_weight=1.0, wkd_level=4,
             reduction='mean'):
    # TODO(synk): only reduction='mean' (the module default) is implemented;
    # the unused `weight` argument mirrors the PyTorch forward signature.
    assert reduction == 'mean'
    N, C, H, W = pred.shape
    J = wkd_level
    assert 1 <= J and J + 1 <= _LANES
    assert H % (1 << J) == 0 and W % (1 << J) == 0, (
        "spatial dims must be divisible by 2**wkd_level (zero-pad path not implemented)")
    # Faithful to the module's leaked loop variable: the final low-band L1 is
    # computed on batch sample `wkd_level - 1` only.
    assert N > J - 1, "module's pred_l[index] indexing needs N > wkd_level-1"

    G = _pick_pack(H, W)
    Hs = H // G                          # packed rows per slab
    lanes = G * W                        # packed lane width
    NC = N * C
    B = _pick_slabs_per_step(NC, Hs, lanes, pred.dtype.itemsize, _num_tensorcores())
    steps = NC // B

    # Pure row-major reshapes (free in XLA): (N,C,H,W) -> (steps, B*H/G, G*W).
    p = pred.reshape(steps, B * Hs, lanes)
    t = target.reshape(steps, B * Hs, lanes)

    slab_spec = pl.BlockSpec((1, B * Hs, lanes), lambda i: (i, 0, 0))
    sums = pl.pallas_call(
        _make_kernel(J, G, W, Hs, C, B),
        out_shape=jax.ShapeDtypeStruct((steps, 1, _LANES), jnp.float32),
        grid=(steps,),
        in_specs=[slab_spec, slab_spec],
        out_specs=pl.BlockSpec((1, 1, _LANES), lambda i: (i, 0, 0)),
        compiler_params=pltpu.CompilerParams(
            dimension_semantics=("parallel",),
            vmem_limit_bytes=32 * 1024 * 1024),
    )(p, t)

    # Per-level mean = (sum over all grid steps) / numel of that level's bands.
    tot = jnp.sum(sums, axis=(0, 1))                          # (LANES,), f32
    loss = jnp.float32(0.0)
    for j in range(J):
        n_high = N * C * 3 * (H >> (j + 1)) * (W >> (j + 1))
        loss = loss + tot[j] / jnp.float32(n_high)
    n_ll = C * (H >> J) * (W >> J)
    loss = loss + tot[J] / jnp.float32(n_ll)
    return jnp.float32(loss_weight) * loss


# ---------------- pure-JAX reference (for a sanity check) ----------------

def _ref_level(x):
    n, c, h, w = x.shape
    s = np.float32(1.0 / np.sqrt(2.0))
    x6 = x.reshape(n, c, h // 2, 2, w // 2, 2)
    a = x6[:, :, :, 0, :, 0]
    b = x6[:, :, :, 0, :, 1]
    cc = x6[:, :, :, 1, :, 0]
    d = x6[:, :, :, 1, :, 1]
    lo_t, hi_t = (a + b) * s, (a - b) * s
    lo_b, hi_b = (cc + d) * s, (cc - d) * s
    ll = (lo_t + lo_b) * s
    lh = (lo_t - lo_b) * s
    hl = (hi_t + hi_b) * s
    hh = (hi_t - hi_b) * s
    return ll, jnp.stack([lh, hl, hh], axis=2)


def _ref_loss(pred, target, loss_weight=1.0, wkd_level=4):
    p_cur, t_cur = pred, target
    loss = 0.0
    idx = None
    for idx in range(wkd_level):
        p_ll, p_h = _ref_level(p_cur)
        t_ll, t_h = _ref_level(t_cur)
        loss = loss + jnp.mean(jnp.abs(t_h - p_h))
        p_cur, t_cur = p_ll, t_ll
    loss = loss + jnp.mean(jnp.abs(t_cur[idx] - p_cur[idx]))
    return loss_weight * loss


if __name__ == "__main__":
    key = jax.random.PRNGKey(0)
    k1, k2 = jax.random.split(key)
    # N >= wkd_level so the module's leaked `pred_l[index]` indexing is valid.
    N, C, H, W = 4, 4, 16, 16
    pred = jax.random.normal(k1, (N, C, H, W), jnp.float32)
    target = jax.random.normal(k2, (N, C, H, W), jnp.float32)

    loss = dwt_loss(pred, target, loss_weight=1.0, wkd_level=4)
    loss = jax.block_until_ready(loss)

    ref = jax.block_until_ready(_ref_loss(pred, target, 1.0, 4))
    np.testing.assert_allclose(np.asarray(loss), np.asarray(ref),
                               rtol=1e-4, atol=1e-5)
    print("KERNEL_OK")
</pallas_src>

<mosaic_0001>
module attributes {stable_mosaic.version = 11 : i64} {
  func.func @kernel(%arg0: i32, %arg1: memref<1x16x256xf32, #tpu.memory_space<vmem>>, %arg2: memref<1x16x256xf32, #tpu.memory_space<vmem>>, %arg3: memref<1x1x128xf32, #tpu.memory_space<vmem>>) attributes {dimension_semantics = [#tpu.dimension_semantics<parallel>], iteration_bounds = array<i64: 1>, scalar_prefetch = 0 : i64, scratch_operands = 0 : i64, tpu.core_type = #tpu.core_type<tc>, window_params = [{transform_indices = @transform_0, window_bounds = array<i64: 1, 16, 256>}, {transform_indices = @transform_1, window_bounds = array<i64: 1, 16, 256>}, {transform_indices = @transform_2, window_bounds = array<i64: 1, 1, 128>}]} {
    %c0 = arith.constant 0 : index
    %c0_0 = arith.constant 0 : index
    %c0_1 = arith.constant 0 : index
    %0 = vector.load %arg2[%c0, %c0_0, %c0_1] : memref<1x16x256xf32, #tpu.memory_space<vmem>>, vector<1x16x256xf32>
    %1 = vector.shape_cast %0 : vector<1x16x256xf32> to vector<16x256xf32>
    %c0_2 = arith.constant 0 : index
    %c0_3 = arith.constant 0 : index
    %c0_4 = arith.constant 0 : index
    %2 = vector.load %arg1[%c0_2, %c0_3, %c0_4] : memref<1x16x256xf32, #tpu.memory_space<vmem>>, vector<1x16x256xf32>
    %3 = vector.shape_cast %2 : vector<1x16x256xf32> to vector<16x256xf32>
    %4 = arith.subf %1, %3 : vector<16x256xf32>
    %5 = tpu.iota {dimensions = array<i32: 0>} : vector<16x256xi32>
    %6 = tpu.iota {dimensions = array<i32: 1>} : vector<16x256xi32>
    %c0_i32 = arith.constant 0 : i32
    %7 = vector.broadcast %c0_i32 : i32 to vector<16x256xi32>
    %c16_i32 = arith.constant 16 : i32
    %8 = vector.broadcast %c16_i32 : i32 to vector<16x256xi32>
    %9 = arith.cmpi sge, %6, %8 : vector<16x256xi32>
    %10 = arith.extui %9 : vector<16x256xi1> to vector<16x256xi32>
    %11 = arith.addi %7, %10 : vector<16x256xi32>
    %c32_i32 = arith.constant 32 : i32
    %12 = vector.broadcast %c32_i32 : i32 to vector<16x256xi32>
    %13 = arith.cmpi sge, %6, %12 : vector<16x256xi32>
    %14 = arith.extui %13 : vector<16x256xi1> to vector<16x256xi32>
    %15 = arith.addi %11, %14 : vector<16x256xi32>
    %c48_i32 = arith.constant 48 : i32
    %16 = vector.broadcast %c48_i32 : i32 to vector<16x256xi32>
    %17 = arith.cmpi sge, %6, %16 : vector<16x256xi32>
    %18 = arith.extui %17 : vector<16x256xi1> to vector<16x256xi32>
    %19 = arith.addi %15, %18 : vector<16x256xi32>
    %c64_i32 = arith.constant 64 : i32
    %20 = vector.broadcast %c64_i32 : i32 to vector<16x256xi32>
    %21 = arith.cmpi sge, %6, %20 : vector<16x256xi32>
    %22 = arith.extui %21 : vector<16x256xi1> to vector<16x256xi32>
    %23 = arith.addi %19, %22 : vector<16x256xi32>
    %c80_i32 = arith.constant 80 : i32
    %24 = vector.broadcast %c80_i32 : i32 to vector<16x256xi32>
    %25 = arith.cmpi sge, %6, %24 : vector<16x256xi32>
    %26 = arith.extui %25 : vector<16x256xi1> to vector<16x256xi32>
    %27 = arith.addi %23, %26 : vector<16x256xi32>
    %c96_i32 = arith.constant 96 : i32
    %28 = vector.broadcast %c96_i32 : i32 to vector<16x256xi32>
    %29 = arith.cmpi sge, %6, %28 : vector<16x256xi32>
    %30 = arith.extui %29 : vector<16x256xi1> to vector<16x256xi32>
    %31 = arith.addi %27, %30 : vector<16x256xi32>
    %c112_i32 = arith.constant 112 : i32
    %32 = vector.broadcast %c112_i32 : i32 to vector<16x256xi32>
    %33 = arith.cmpi sge, %6, %32 : vector<16x256xi32>
    %34 = arith.extui %33 : vector<16x256xi1> to vector<16x256xi32>
    %35 = arith.addi %31, %34 : vector<16x256xi32>
    %c128_i32 = arith.constant 128 : i32
    %36 = vector.broadcast %c128_i32 : i32 to vector<16x256xi32>
    %37 = arith.cmpi sge, %6, %36 : vector<16x256xi32>
    %38 = arith.extui %37 : vector<16x256xi1> to vector<16x256xi32>
    %39 = arith.addi %35, %38 : vector<16x256xi32>
    %c144_i32 = arith.constant 144 : i32
    %40 = vector.broadcast %c144_i32 : i32 to vector<16x256xi32>
    %41 = arith.cmpi sge, %6, %40 : vector<16x256xi32>
    %42 = arith.extui %41 : vector<16x256xi1> to vector<16x256xi32>
    %43 = arith.addi %39, %42 : vector<16x256xi32>
    %c160_i32 = arith.constant 160 : i32
    %44 = vector.broadcast %c160_i32 : i32 to vector<16x256xi32>
    %45 = arith.cmpi sge, %6, %44 : vector<16x256xi32>
    %46 = arith.extui %45 : vector<16x256xi1> to vector<16x256xi32>
    %47 = arith.addi %43, %46 : vector<16x256xi32>
    %c176_i32 = arith.constant 176 : i32
    %48 = vector.broadcast %c176_i32 : i32 to vector<16x256xi32>
    %49 = arith.cmpi sge, %6, %48 : vector<16x256xi32>
    %50 = arith.extui %49 : vector<16x256xi1> to vector<16x256xi32>
    %51 = arith.addi %47, %50 : vector<16x256xi32>
    %c192_i32 = arith.constant 192 : i32
    %52 = vector.broadcast %c192_i32 : i32 to vector<16x256xi32>
    %53 = arith.cmpi sge, %6, %52 : vector<16x256xi32>
    %54 = arith.extui %53 : vector<16x256xi1> to vector<16x256xi32>
    %55 = arith.addi %51, %54 : vector<16x256xi32>
    %c208_i32 = arith.constant 208 : i32
    %56 = vector.broadcast %c208_i32 : i32 to vector<16x256xi32>
    %57 = arith.cmpi sge, %6, %56 : vector<16x256xi32>
    %58 = arith.extui %57 : vector<16x256xi1> to vector<16x256xi32>
    %59 = arith.addi %55, %58 : vector<16x256xi32>
    %c224_i32 = arith.constant 224 : i32
    %60 = vector.broadcast %c224_i32 : i32 to vector<16x256xi32>
    %61 = arith.cmpi sge, %6, %60 : vector<16x256xi32>
    %62 = arith.extui %61 : vector<16x256xi1> to vector<16x256xi32>
    %63 = arith.addi %59, %62 : vector<16x256xi32>
    %c240_i32 = arith.constant 240 : i32
    %64 = vector.broadcast %c240_i32 : i32 to vector<16x256xi32>
    %65 = arith.cmpi sge, %6, %64 : vector<16x256xi32>
    %66 = arith.extui %65 : vector<16x256xi1> to vector<16x256xi32>
    %67 = arith.addi %63, %66 : vector<16x256xi32>
    %c16_i32_5 = arith.constant 16 : i32
    %68 = vector.broadcast %c16_i32_5 : i32 to vector<16x256xi32>
    %69 = arith.muli %68, %5 : vector<16x256xi32>
    %70 = arith.addi %69, %67 : vector<16x256xi32>
    %c1_i32 = arith.constant 1 : i32
    %71 = vector.broadcast %c1_i32 : i32 to vector<16x256xi32>
    %72 = arith.andi %70, %71 : vector<16x256xi32>
    %c0_i32_6 = arith.constant 0 : i32
    %73 = vector.broadcast %c0_i32_6 : i32 to vector<16x256xi32>
    %74 = arith.cmpi eq, %72, %73 : vector<16x256xi32>
    %c1_i32_7 = arith.constant 1 : i32
    %75 = vector.broadcast %c1_i32_7 : i32 to vector<16x256xi32>
    %76 = arith.andi %6, %75 : vector<16x256xi32>
    %c0_i32_8 = arith.constant 0 : i32
    %77 = vector.broadcast %c0_i32_8 : i32 to vector<16x256xi32>
    %78 = arith.cmpi eq, %76, %77 : vector<16x256xi32>
    %79 = vector.extract_strided_slice %4 {offsets = [0, 16], sizes = [16, 240], strides = [1, 1]} : vector<16x256xf32> to vector<16x240xf32>
    %80 = vector.extract_strided_slice %4 {offsets = [0, 0], sizes = [16, 16], strides = [1, 1]} : vector<16x256xf32> to vector<16x16xf32>
    %81 = tpu.concatenate %79, %80 in 1 : vector<16x240xf32>, vector<16x16xf32> -> vector<16x256xf32>
    %82 = vector.extract_strided_slice %4 {offsets = [0, 240], sizes = [16, 16], strides = [1, 1]} : vector<16x256xf32> to vector<16x16xf32>
    %83 = vector.extract_strided_slice %4 {offsets = [0, 0], sizes = [16, 240], strides = [1, 1]} : vector<16x256xf32> to vector<16x240xf32>
    %84 = tpu.concatenate %82, %83 in 1 : vector<16x16xf32>, vector<16x240xf32> -> vector<16x256xf32>
    %85 = arith.addf %4, %81 : vector<16x256xf32>
    %86 = arith.subf %84, %4 : vector<16x256xf32>
    %87 = arith.select %74, %85, %86 : vector<16x256xi1>, vector<16x256xf32>
    %cst = arith.constant 0.707106769 : f32
    %88 = vector.broadcast %cst : f32 to vector<16x256xf32>
    %89 = arith.mulf %87, %88 : vector<16x256xf32>
    %90 = vector.extract_strided_slice %89 {offsets = [0, 1], sizes = [16, 255], strides = [1, 1]} : vector<16x256xf32> to vector<16x255xf32>
    %91 = vector.extract_strided_slice %89 {offsets = [0, 0], sizes = [16, 1], strides = [1, 1]} : vector<16x256xf32> to vector<16x1xf32>
    %92 = tpu.concatenate %90, %91 in 1 : vector<16x255xf32>, vector<16x1xf32> -> vector<16x256xf32>
    %93 = vector.extract_strided_slice %89 {offsets = [0, 255], sizes = [16, 1], strides = [1, 1]} : vector<16x256xf32> to vector<16x1xf32>
    %94 = vector.extract_strided_slice %89 {offsets = [0, 0], sizes = [16, 255], strides = [1, 1]} : vector<16x256xf32> to vector<16x255xf32>
    %95 = tpu.concatenate %93, %94 in 1 : vector<16x1xf32>, vector<16x255xf32> -> vector<16x256xf32>
    %96 = arith.addf %89, %92 : vector<16x256xf32>
    %97 = arith.subf %95, %89 : vector<16x256xf32>
    %98 = arith.select %78, %96, %97 : vector<16x256xi1>, vector<16x256xf32>
    %cst_9 = arith.constant 0.707106769 : f32
    %99 = vector.broadcast %cst_9 : f32 to vector<16x256xf32>
    %100 = arith.mulf %98, %99 : vector<16x256xf32>
    %101 = arith.andi %74, %78 : vector<16x256xi1>
    %cst_10 = arith.constant dense<true> : vector<16x256xi1>
    %102 = arith.xori %101, %cst_10 : vector<16x256xi1>
    %103 = math.absf %100 : vector<16x256xf32>
    %cst_11 = arith.constant 0.000000e+00 : f32
    %104 = vector.broadcast %cst_11 : f32 to vector<16x256xf32>
    %105 = arith.select %102, %103, %104 : vector<16x256xi1>, vector<16x256xf32>
    %106 = vector.shape_cast %105 : vector<16x256xf32> to vector<1x16x256xf32>
    %cst_12 = arith.constant dense<0.000000e+00> : vector<1xf32>
    %107 = vector.multi_reduction <add>, %106, %cst_12 [1, 2] : vector<1x16x256xf32> to vector<1xf32>
    %108 = vector.shape_cast %107 : vector<1xf32> to vector<1x1x1xf32>
    %109 = vector.extract %108[0, 0, 0] : f32 from vector<1x1x1xf32>
    %c3_i32 = arith.constant 3 : i32
    %110 = vector.broadcast %c3_i32 : i32 to vector<16x256xi32>
    %111 = arith.andi %70, %110 : vector<16x256xi32>
    %c0_i32_13 = arith.constant 0 : i32
    %112 = vector.broadcast %c0_i32_13 : i32 to vector<16x256xi32>
    %113 = arith.cmpi eq, %111, %112 : vector<16x256xi32>
    %c3_i32_14 = arith.constant 3 : i32
    %114 = vector.broadcast %c3_i32_14 : i32 to vector<16x256xi32>
    %115 = arith.andi %6, %114 : vector<16x256xi32>
    %c0_i32_15 = arith.constant 0 : i32
    %116 = vector.broadcast %c0_i32_15 : i32 to vector<16x256xi32>
    %117 = arith.cmpi eq, %115, %116 : vector<16x256xi32>
    %118 = vector.extract_strided_slice %100 {offsets = [0, 32], sizes = [16, 224], strides = [1, 1]} : vector<16x256xf32> to vector<16x224xf32>
    %119 = vector.extract_strided_slice %100 {offsets = [0, 0], sizes = [16, 32], strides = [1, 1]} : vector<16x256xf32> to vector<16x32xf32>
    %120 = tpu.concatenate %118, %119 in 1 : vector<16x224xf32>, vector<16x32xf32> -> vector<16x256xf32>
    %121 = vector.extract_strided_slice %100 {offsets = [0, 224], sizes = [16, 32], strides = [1, 1]} : vector<16x256xf32> to vector<16x32xf32>
    %122 = vector.extract_strided_slice %100 {offsets = [0, 0], sizes = [16, 224], strides = [1, 1]} : vector<16x256xf32> to vector<16x224xf32>
    %123 = tpu.concatenate %121, %122 in 1 : vector<16x32xf32>, vector<16x224xf32> -> vector<16x256xf32>
    %124 = arith.addf %100, %120 : vector<16x256xf32>
    %125 = arith.subf %123, %100 : vector<16x256xf32>
    %126 = arith.select %113, %124, %125 : vector<16x256xi1>, vector<16x256xf32>
    %cst_16 = arith.constant 0.707106769 : f32
    %127 = vector.broadcast %cst_16 : f32 to vector<16x256xf32>
    %128 = arith.mulf %126, %127 : vector<16x256xf32>
    %129 = vector.extract_strided_slice %128 {offsets = [0, 2], sizes = [16, 254], strides = [1, 1]} : vector<16x256xf32> to vector<16x254xf32>
    %130 = vector.extract_strided_slice %128 {offsets = [0, 0], sizes = [16, 2], strides = [1, 1]} : vector<16x256xf32> to vector<16x2xf32>
    %131 = tpu.concatenate %129, %130 in 1 : vector<16x254xf32>, vector<16x2xf32> -> vector<16x256xf32>
    %132 = vector.extract_strided_slice %128 {offsets = [0, 254], sizes = [16, 2], strides = [1, 1]} : vector<16x256xf32> to vector<16x2xf32>
    %133 = vector.extract_strided_slice %128 {offsets = [0, 0], sizes = [16, 254], strides = [1, 1]} : vector<16x256xf32> to vector<16x254xf32>
    %134 = tpu.concatenate %132, %133 in 1 : vector<16x2xf32>, vector<16x254xf32> -> vector<16x256xf32>
    %135 = arith.addf %128, %131 : vector<16x256xf32>
    %136 = arith.subf %134, %128 : vector<16x256xf32>
    %137 = arith.select %117, %135, %136 : vector<16x256xi1>, vector<16x256xf32>
    %cst_17 = arith.constant 0.707106769 : f32
    %138 = vector.broadcast %cst_17 : f32 to vector<16x256xf32>
    %139 = arith.mulf %137, %138 : vector<16x256xf32>
    %c1_i32_18 = arith.constant 1 : i32
    %140 = vector.broadcast %c1_i32_18 : i32 to vector<16x256xi32>
    %141 = arith.andi %70, %140 : vector<16x256xi32>
    %c0_i32_19 = arith.constant 0 : i32
    %142 = vector.broadcast %c0_i32_19 : i32 to vector<16x256xi32>
    %143 = arith.cmpi eq, %141, %142 : vector<16x256xi32>
    %c1_i32_20 = arith.constant 1 : i32
    %144 = vector.broadcast %c1_i32_20 : i32 to vector<16x256xi32>
    %145 = arith.andi %6, %144 : vector<16x256xi32>
    %c0_i32_21 = arith.constant 0 : i32
    %146 = vector.broadcast %c0_i32_21 : i32 to vector<16x256xi32>
    %147 = arith.cmpi eq, %145, %146 : vector<16x256xi32>
    %148 = arith.andi %143, %147 : vector<16x256xi1>
    %149 = arith.select %148, %139, %100 : vector<16x256xi1>, vector<16x256xf32>
    %150 = arith.andi %113, %117 : vector<16x256xi1>
    %cst_22 = arith.constant dense<true> : vector<16x256xi1>
    %151 = arith.xori %150, %cst_22 : vector<16x256xi1>
    %152 = arith.andi %148, %151 : vector<16x256xi1>
    %153 = math.absf %149 : vector<16x256xf32>
    %cst_23 = arith.constant 0.000000e+00 : f32
    %154 = vector.broadcast %cst_23 : f32 to vector<16x256xf32>
    %155 = arith.select %152, %153, %154 : vector<16x256xi1>, vector<16x256xf32>
    %156 = vector.shape_cast %155 : vector<16x256xf32> to vector<1x16x256xf32>
    %cst_24 = arith.constant dense<0.000000e+00> : vector<1xf32>
    %157 = vector.multi_reduction <add>, %156, %cst_24 [1, 2] : vector<1x16x256xf32> to vector<1xf32>
    %158 = vector.shape_cast %157 : vector<1xf32> to vector<1x1x1xf32>
    %159 = vector.extract %158[0, 0, 0] : f32 from vector<1x1x1xf32>
    %c7_i32 = arith.constant 7 : i32
    %160 = vector.broadcast %c7_i32 : i32 to vector<16x256xi32>
    %161 = arith.andi %70, %160 : vector<16x256xi32>
    %c0_i32_25 = arith.constant 0 : i32
    %162 = vector.broadcast %c0_i32_25 : i32 to vector<16x256xi32>
    %163 = arith.cmpi eq, %161, %162 : vector<16x256xi32>
    %c7_i32_26 = arith.constant 7 : i32
    %164 = vector.broadcast %c7_i32_26 : i32 to vector<16x256xi32>
    %165 = arith.andi %6, %164 : vector<16x256xi32>
    %c0_i32_27 = arith.constant 0 : i32
    %166 = vector.broadcast %c0_i32_27 : i32 to vector<16x256xi32>
    %167 = arith.cmpi eq, %165, %166 : vector<16x256xi32>
    %168 = vector.extract_strided_slice %149 {offsets = [0, 64], sizes = [16, 192], strides = [1, 1]} : vector<16x256xf32> to vector<16x192xf32>
    %169 = vector.extract_strided_slice %149 {offsets = [0, 0], sizes = [16, 64], strides = [1, 1]} : vector<16x256xf32> to vector<16x64xf32>
    %170 = tpu.concatenate %168, %169 in 1 : vector<16x192xf32>, vector<16x64xf32> -> vector<16x256xf32>
    %171 = vector.extract_strided_slice %149 {offsets = [0, 192], sizes = [16, 64], strides = [1, 1]} : vector<16x256xf32> to vector<16x64xf32>
    %172 = vector.extract_strided_slice %149 {offsets = [0, 0], sizes = [16, 192], strides = [1, 1]} : vector<16x256xf32> to vector<16x192xf32>
    %173 = tpu.concatenate %171, %172 in 1 : vector<16x64xf32>, vector<16x192xf32> -> vector<16x256xf32>
    %174 = arith.addf %149, %170 : vector<16x256xf32>
    %175 = arith.subf %173, %149 : vector<16x256xf32>
    %176 = arith.select %163, %174, %175 : vector<16x256xi1>, vector<16x256xf32>
    %cst_28 = arith.constant 0.707106769 : f32
    %177 = vector.broadcast %cst_28 : f32 to vector<16x256xf32>
    %178 = arith.mulf %176, %177 : vector<16x256xf32>
    %179 = vector.extract_strided_slice %178 {offsets = [0, 4], sizes = [16, 252], strides = [1, 1]} : vector<16x256xf32> to vector<16x252xf32>
    %180 = vector.extract_strided_slice %178 {offsets = [0, 0], sizes = [16, 4], strides = [1, 1]} : vector<16x256xf32> to vector<16x4xf32>
    %181 = tpu.concatenate %179, %180 in 1 : vector<16x252xf32>, vector<16x4xf32> -> vector<16x256xf32>
    %182 = vector.extract_strided_slice %178 {offsets = [0, 252], sizes = [16, 4], strides = [1, 1]} : vector<16x256xf32> to vector<16x4xf32>
    %183 = vector.extract_strided_slice %178 {offsets = [0, 0], sizes = [16, 252], strides = [1, 1]} : vector<16x256xf32> to vector<16x252xf32>
    %184 = tpu.concatenate %182, %183 in 1 : vector<16x4xf32>, vector<16x252xf32> -> vector<16x256xf32>
    %185 = arith.addf %178, %181 : vector<16x256xf32>
    %186 = arith.subf %184, %178 : vector<16x256xf32>
    %187 = arith.select %167, %185, %186 : vector<16x256xi1>, vector<16x256xf32>
    %cst_29 = arith.constant 0.707106769 : f32
    %188 = vector.broadcast %cst_29 : f32 to vector<16x256xf32>
    %189 = arith.mulf %187, %188 : vector<16x256xf32>
    %c3_i32_30 = arith.constant 3 : i32
    %190 = vector.broadcast %c3_i32_30 : i32 to vector<16x256xi32>
    %191 = arith.andi %70, %190 : vector<16x256xi32>
    %c0_i32_31 = arith.constant 0 : i32
    %192 = vector.broadcast %c0_i32_31 : i32 to vector<16x256xi32>
    %193 = arith.cmpi eq, %191, %192 : vector<16x256xi32>
    %c3_i32_32 = arith.constant 3 : i32
    %194 = vector.broadcast %c3_i32_32 : i32 to vector<16x256xi32>
    %195 = arith.andi %6, %194 : vector<16x256xi32>
    %c0_i32_33 = arith.constant 0 : i32
    %196 = vector.broadcast %c0_i32_33 : i32 to vector<16x256xi32>
    %197 = arith.cmpi eq, %195, %196 : vector<16x256xi32>
    %198 = arith.andi %193, %197 : vector<16x256xi1>
    %199 = arith.select %198, %189, %149 : vector<16x256xi1>, vector<16x256xf32>
    %200 = arith.andi %163, %167 : vector<16x256xi1>
    %cst_34 = arith.constant dense<true> : vector<16x256xi1>
    %201 = arith.xori %200, %cst_34 : vector<16x256xi1>
    %202 = arith.andi %198, %201 : vector<16x256xi1>
    %203 = math.absf %199 : vector<16x256xf32>
    %cst_35 = arith.constant 0.000000e+00 : f32
    %204 = vector.broadcast %cst_35 : f32 to vector<16x256xf32>
    %205 = arith.select %202, %203, %204 : vector<16x256xi1>, vector<16x256xf32>
    %206 = vector.shape_cast %205 : vector<16x256xf32> to vector<1x16x256xf32>
    %cst_36 = arith.constant dense<0.000000e+00> : vector<1xf32>
    %207 = vector.multi_reduction <add>, %206, %cst_36 [1, 2] : vector<1x16x256xf32> to vector<1xf32>
    %208 = vector.shape_cast %207 : vector<1xf32> to vector<1x1x1xf32>
    %209 = vector.extract %208[0, 0, 0] : f32 from vector<1x1x1xf32>
    %c15_i32 = arith.constant 15 : i32
    %210 = vector.broadcast %c15_i32 : i32 to vector<16x256xi32>
    %211 = arith.andi %70, %210 : vector<16x256xi32>
    %c0_i32_37 = arith.constant 0 : i32
    %212 = vector.broadcast %c0_i32_37 : i32 to vector<16x256xi32>
    %213 = arith.cmpi eq, %211, %212 : vector<16x256xi32>
    %c15_i32_38 = arith.constant 15 : i32
    %214 = vector.broadcast %c15_i32_38 : i32 to vector<16x256xi32>
    %215 = arith.andi %6, %214 : vector<16x256xi32>
    %c0_i32_39 = arith.constant 0 : i32
    %216 = vector.broadcast %c0_i32_39 : i32 to vector<16x256xi32>
    %217 = arith.cmpi eq, %215, %216 : vector<16x256xi32>
    %218 = vector.extract_strided_slice %199 {offsets = [0, 128], sizes = [16, 128], strides = [1, 1]} : vector<16x256xf32> to vector<16x128xf32>
    %219 = vector.extract_strided_slice %199 {offsets = [0, 0], sizes = [16, 128], strides = [1, 1]} : vector<16x256xf32> to vector<16x128xf32>
    %220 = tpu.concatenate %218, %219 in 1 : vector<16x128xf32>, vector<16x128xf32> -> vector<16x256xf32>
    %221 = vector.extract_strided_slice %199 {offsets = [0, 128], sizes = [16, 128], strides = [1, 1]} : vector<16x256xf32> to vector<16x128xf32>
    %222 = vector.extract_strided_slice %199 {offsets = [0, 0], sizes = [16, 128], strides = [1, 1]} : vector<16x256xf32> to vector<16x128xf32>
    %223 = tpu.concatenate %221, %222 in 1 : vector<16x128xf32>, vector<16x128xf32> -> vector<16x256xf32>
    %224 = arith.addf %199, %220 : vector<16x256xf32>
    %225 = arith.subf %223, %199 : vector<16x256xf32>
    %226 = arith.select %213, %224, %225 : vector<16x256xi1>, vector<16x256xf32>
    %cst_40 = arith.constant 0.707106769 : f32
    %227 = vector.broadcast %cst_40 : f32 to vector<16x256xf32>
    %228 = arith.mulf %226, %227 : vector<16x256xf32>
    %229 = vector.extract_strided_slice %228 {offsets = [0, 8], sizes = [16, 248], strides = [1, 1]} : vector<16x256xf32> to vector<16x248xf32>
    %230 = vector.extract_strided_slice %228 {offsets = [0, 0], sizes = [16, 8], strides = [1, 1]} : vector<16x256xf32> to vector<16x8xf32>
    %231 = tpu.concatenate %229, %230 in 1 : vector<16x248xf32>, vector<16x8xf32> -> vector<16x256xf32>
    %232 = vector.extract_strided_slice %228 {offsets = [0, 248], sizes = [16, 8], strides = [1, 1]} : vector<16x256xf32> to vector<16x8xf32>
    %233 = vector.extract_strided_slice %228 {offsets = [0, 0], sizes = [16, 248], strides = [1, 1]} : vector<16x256xf32> to vector<16x248xf32>
    %234 = tpu.concatenate %232, %233 in 1 : vector<16x8xf32>, vector<16x248xf32> -> vector<16x256xf32>
    %235 = arith.addf %228, %231 : vector<16x256xf32>
    %236 = arith.subf %234, %228 : vector<16x256xf32>
    %237 = arith.select %217, %235, %236 : vector<16x256xi1>, vector<16x256xf32>
    %cst_41 = arith.constant 0.707106769 : f32
    %238 = vector.broadcast %cst_41 : f32 to vector<16x256xf32>
    %239 = arith.mulf %237, %238 : vector<16x256xf32>
    %c7_i32_42 = arith.constant 7 : i32
    %240 = vector.broadcast %c7_i32_42 : i32 to vector<16x256xi32>
    %241 = arith.andi %70, %240 : vector<16x256xi32>
    %c0_i32_43 = arith.constant 0 : i32
    %242 = vector.broadcast %c0_i32_43 : i32 to vector<16x256xi32>
    %243 = arith.cmpi eq, %241, %242 : vector<16x256xi32>
    %c7_i32_44 = arith.constant 7 : i32
    %244 = vector.broadcast %c7_i32_44 : i32 to vector<16x256xi32>
    %245 = arith.andi %6, %244 : vector<16x256xi32>
    %c0_i32_45 = arith.constant 0 : i32
    %246 = vector.broadcast %c0_i32_45 : i32 to vector<16x256xi32>
    %247 = arith.cmpi eq, %245, %246 : vector<16x256xi32>
    %248 = arith.andi %243, %247 : vector<16x256xi1>
    %249 = arith.select %248, %239, %199 : vector<16x256xi1>, vector<16x256xf32>
    %250 = arith.andi %213, %217 : vector<16x256xi1>
    %cst_46 = arith.constant dense<true> : vector<16x256xi1>
    %251 = arith.xori %250, %cst_46 : vector<16x256xi1>
    %252 = arith.andi %248, %251 : vector<16x256xi1>
    %253 = math.absf %249 : vector<16x256xf32>
    %cst_47 = arith.constant 0.000000e+00 : f32
    %254 = vector.broadcast %cst_47 : f32 to vector<16x256xf32>
    %255 = arith.select %252, %253, %254 : vector<16x256xi1>, vector<16x256xf32>
    %256 = vector.shape_cast %255 : vector<16x256xf32> to vector<1x16x256xf32>
    %cst_48 = arith.constant dense<0.000000e+00> : vector<1xf32>
    %257 = vector.multi_reduction <add>, %256, %cst_48 [1, 2] : vector<1x16x256xf32> to vector<1xf32>
    %258 = vector.shape_cast %257 : vector<1xf32> to vector<1x1x1xf32>
    %259 = vector.extract %258[0, 0, 0] : f32 from vector<1x1x1xf32>
    %c15_i32_49 = arith.constant 15 : i32
    %260 = vector.broadcast %c15_i32_49 : i32 to vector<16x256xi32>
    %261 = arith.andi %70, %260 : vector<16x256xi32>
    %c0_i32_50 = arith.constant 0 : i32
    %262 = vector.broadcast %c0_i32_50 : i32 to vector<16x256xi32>
    %263 = arith.cmpi eq, %261, %262 : vector<16x256xi32>
    %c15_i32_51 = arith.constant 15 : i32
    %264 = vector.broadcast %c15_i32_51 : i32 to vector<16x256xi32>
    %265 = arith.andi %6, %264 : vector<16x256xi32>
    %c0_i32_52 = arith.constant 0 : i32
    %266 = vector.broadcast %c0_i32_52 : i32 to vector<16x256xi32>
    %267 = arith.cmpi eq, %265, %266 : vector<16x256xi32>
    %268 = arith.andi %263, %267 : vector<16x256xi1>
    %c16_i32_53 = arith.constant 16 : i32
    %269 = arith.muli %arg0, %c16_i32_53 : i32
    %c12_i32 = arith.constant 12 : i32
    %270 = arith.subi %c12_i32, %269 : i32
    %c1_i32_54 = arith.constant 1 : i32
    %271 = arith.muli %270, %c1_i32_54 : i32
    %c16_i32_55 = arith.constant 16 : i32
    %272 = arith.muli %arg0, %c16_i32_55 : i32
    %c16_i32_56 = arith.constant 16 : i32
    %273 = arith.subi %c16_i32_56, %272 : i32
    %c1_i32_57 = arith.constant 1 : i32
    %274 = arith.muli %273, %c1_i32_57 : i32
    %275 = vector.broadcast %271 : i32 to vector<16x256xi32>
    %276 = arith.cmpi sge, %5, %275 : vector<16x256xi32>
    %277 = vector.broadcast %274 : i32 to vector<16x256xi32>
    %278 = arith.cmpi slt, %5, %277 : vector<16x256xi32>
    %279 = arith.andi %276, %278 : vector<16x256xi1>
    %280 = arith.andi %268, %279 : vector<16x256xi1>
    %281 = math.absf %249 : vector<16x256xf32>
    %cst_58 = arith.constant 0.000000e+00 : f32
    %282 = vector.broadcast %cst_58 : f32 to vector<16x256xf32>
    %283 = arith.select %280, %281, %282 : vector<16x256xi1>, vector<16x256xf32>
    %284 = vector.shape_cast %283 : vector<16x256xf32> to vector<1x16x256xf32>
    %cst_59 = arith.constant dense<0.000000e+00> : vector<1xf32>
    %285 = vector.multi_reduction <add>, %284, %cst_59 [1, 2] : vector<1x16x256xf32> to vector<1xf32>
    %286 = vector.shape_cast %285 : vector<1xf32> to vector<1x1x1xf32>
    %287 = vector.extract %286[0, 0, 0] : f32 from vector<1x1x1xf32>
    %288 = tpu.iota {dimensions = array<i32: 1>} : vector<1x128xi32>
    %cst_60 = arith.constant 0.000000e+00 : f32
    %289 = vector.broadcast %cst_60 : f32 to vector<1x128xf32>
    %c0_i32_61 = arith.constant 0 : i32
    %290 = vector.broadcast %c0_i32_61 : i32 to vector<1x128xi32>
    %291 = arith.cmpi eq, %288, %290 : vector<1x128xi32>
    %292 = vector.broadcast %109 : f32 to vector<1x128xf32>
    %293 = arith.select %291, %292, %289 : vector<1x128xi1>, vector<1x128xf32>
    %c1_i32_62 = arith.constant 1 : i32
    %294 = vector.broadcast %c1_i32_62 : i32 to vector<1x128xi32>
    %295 = arith.cmpi eq, %288, %294 : vector<1x128xi32>
    %296 = vector.broadcast %159 : f32 to vector<1x128xf32>
    %297 = arith.select %295, %296, %293 : vector<1x128xi1>, vector<1x128xf32>
    %c2_i32 = arith.constant 2 : i32
    %298 = vector.broadcast %c2_i32 : i32 to vector<1x128xi32>
    %299 = arith.cmpi eq, %288, %298 : vector<1x128xi32>
    %300 = vector.broadcast %209 : f32 to vector<1x128xf32>
    %301 = arith.select %299, %300, %297 : vector<1x128xi1>, vector<1x128xf32>
    %c3_i32_63 = arith.constant 3 : i32
    %302 = vector.broadcast %c3_i32_63 : i32 to vector<1x128xi32>
    %303 = arith.cmpi eq, %288, %302 : vector<1x128xi32>
    %304 = vector.broadcast %259 : f32 to vector<1x128xf32>
    %305 = arith.select %303, %304, %301 : vector<1x128xi1>, vector<1x128xf32>
    %c4_i32 = arith.constant 4 : i32
    %306 = vector.broadcast %c4_i32 : i32 to vector<1x128xi32>
    %307 = arith.cmpi eq, %288, %306 : vector<1x128xi32>
    %308 = vector.broadcast %287 : f32 to vector<1x128xf32>
    %309 = arith.select %307, %308, %305 : vector<1x128xi1>, vector<1x128xf32>
    %c0_64 = arith.constant 0 : index
    %c0_65 = arith.constant 0 : index
    %c0_66 = arith.constant 0 : index
    %310 = vector.load %arg3[%c0_64, %c0_65, %c0_66] : memref<1x1x128xf32, #tpu.memory_space<vmem>>, vector<1x1x128xf32>
    %311 = vector.shape_cast %310 : vector<1x1x128xf32> to vector<1x128xf32>
    %312 = vector.shape_cast %309 : vector<1x128xf32> to vector<1x1x128xf32>
    tpu.vector_store %arg3[%c0_64, %c0_65, %c0_66], %312 {strides = array<i32>} : memref<1x1x128xf32, #tpu.memory_space<vmem>>, vector<1x1x128xf32>,
    return
  }
  func.func @transform_0(%arg0: i32) -> (i32, i32, i32) {
    %c0_i32 = arith.constant 0 : i32
    %c0_i32_0 = arith.constant 0 : i32
    %c0_i32_1 = arith.constant 0 : i32
    return %arg0, %c0_i32, %c0_i32_0 : i32, i32, i32
  }
  func.func @transform_1(%arg0: i32) -> (i32, i32, i32) {
    %c0_i32 = arith.constant 0 : i32
    %c0_i32_0 = arith.constant 0 : i32
    %c0_i32_1 = arith.constant 0 : i32
    return %arg0, %c0_i32, %c0_i32_0 : i32, i32, i32
  }
  func.func @transform_2(%arg0: i32) -> (i32, i32, i32) {
    %c0_i32 = arith.constant 0 : i32
    %c0_i32_0 = arith.constant 0 : i32
    %c0_i32_1 = arith.constant 0 : i32
    return %arg0, %c0_i32, %c0_i32_0 : i32, i32, i32
  }
}

</mosaic_0001>

<bundles_post_ra>
// kernel: tpu_custom_call.1
= control target key start
LH: loop header
LB: loop body
LE: loop exit
PB: predicated region body
PF: predicated region fallthrough
CT: control target
= control target key end

     0   :  { %7 = vsyncpa [#allocation3], 0  ;;  %s1697_s0 = inlined_call_operand.hbm [shape: f32[1,16,256], index: 0, kind: input, shape index: {}]   ;;  %s1698_s1 = inlined_call_operand.hbm [shape: f32[1,16,256], index: 1, kind: input, shape index: {}]   ;;  %s1699_s2 = inlined_call_operand.hbm [shape: f32[1,1,128], index: 2, kind: output, shape index: {}]  }
   0x1   :  { %8 = vsyncpa [#allocation6], 0 }
   0x2   :  { %9 = vsyncpa [#allocation4], 0  ;;  %s901_s9 = smov [#allocation2]   ;;  %s829_s13 = scalar_lea.hbm %s1697_s0, 512 }
   0x3   :  { %s15_s10 = sshll.u32 %s901_s9, 4  ;;  %p830_p0 = scmp.ne.s32.totalorder %s1697_s0, %s829_s13  ;;  %s16_s10 = int_to_ptr.vmem [resolvable:$true] %s15_s10 }
   0x4   :  { %p833_p1 = scmp.lt.u32.totalorder %s829_s13, %s1697_s0 }
   0x6   :  { %p835_p2 = pnand %p833_p1, %p830_p0 }
   0x8   :  { %838 = shalt.err (!%p835_p2)
}
   0x9   :  { %s839_s18 = scalar_lea.vmem %s16_s10, 512  ;;  %p844_p4 = scmp.lt.s32.totalorder %s16_s10, %s16_s10 }
   0xa   :  { %p840_p3 = scmp.ne.s32.totalorder %s16_s10, %s839_s18  ;;  %p845_p5 = scmp.lt.s32.totalorder %s839_s18, %s839_s18 }
   0xc   :  { %p846_p6 = por %p845_p5, %p844_p4 }
   0xe   :  { %p847_p7 = pnand %p846_p6, %p840_p3 }
  0x10   :  { %850 = shalt.err (!%p847_p7)
}
  0x11   :  { %s902_s19 = smov 256   ;;  %s903_s20 = smov 16  }
  0x12   :  { %21 = dma.hbm_to_vmem [thread:$0]  %s1697_s0, 512, %s16_s10, [#allocation3], %s902_s19, %s902_s19, %s903_s20  }
  0x13   :  { %s904_s23 = smov [#allocation5]   ;;  %s851_s27 = scalar_lea.hbm %s1698_s1, 512 }
  0x14   :  { %s27_s24 = sshll.u32 %s904_s23, 4  ;;  %p852_p8 = scmp.ne.s32.totalorder %s1698_s1, %s851_s27  ;;  %s28_s24 = int_to_ptr.vmem [resolvable:$true] %s27_s24 }
  0x15   :  { %p855_p9 = scmp.lt.u32.totalorder %s851_s27, %s1698_s1 }
  0x17   :  { %p857_p10 = pnand %p855_p9, %p852_p8 }
  0x19   :  { %860 = shalt.err (!%p857_p10)
}
  0x1a   :  { %s861_s4 = scalar_lea.vmem %s28_s24, 512  ;;  %p866_p12 = scmp.lt.s32.totalorder %s28_s24, %s28_s24 }
  0x1b   :  { %p862_p11 = scmp.ne.s32.totalorder %s28_s24, %s861_s4  ;;  %p867_p13 = scmp.lt.s32.totalorder %s861_s4, %s861_s4 }
  0x1d   :  { %p868_p0 = por %p867_p13, %p866_p12 }
  0x1f   :  { %p869_p1 = pnand %p868_p0, %p862_p11 }
  0x21   :  { %872 = shalt.err (!%p869_p1)
}
  0x22   :  { %33 = dma.hbm_to_vmem [thread:$0]  %s1698_s1, 512, %s28_s24, [#allocation6], %s902_s19, %s902_s19, %s903_s20  }
  0x23   :  { %895 = dma.done.wait [#allocation3], 512  }
  0x24   :  { %896 = vsyncadd [#allocation3], 4294966784 }
  0x25   :  { %897 = dma.done.wait [#allocation6], 512  }
  0x26   :  { %898 = vsyncadd [#allocation6], 4294966784  ;;  %v41_v0 = vld [vmem:[#allocation5 + $0x8] sm:$0xff]  ;;  %v40_v2 = vld [vmem:[#allocation5] sm:$0xff]  ;;  %s905_s6 = smov 112   ;;  %v52_v12 = vlaneseq  ;;  %v906_v15 = vmov 0  }
  0x27   :  { %v45_v1 = vld [vmem:[#allocation2 + $0x8] sm:$0xff]  ;;  %v44_v4 = vld [vmem:[#allocation2] sm:$0xff]  ;;  %v43_v6 = vld [vmem:[#allocation5 + $0x18] sm:$0xff]  ;;  %vm197_vm14 = vcmask 130048   ;;  %vm176_vm15 = vcmask 916480   ;;  %s907_s1 = smov 127  }
  0x28   :  { %v961_v3 = vsub.f32 %v41_v0, %v45_v1  ;;  %v963_v5 = vsub.f32 %v40_v2, %v44_v4  ;;  %v47_v7 = vld [vmem:[#allocation2 + $0x18] sm:$0xff]  ;;  %v42_v8 = vld [vmem:[#allocation5 + $0x10] sm:$0xff]  ;;  %v981_v13 = vand.u32 127, %v52_v12  ;;  %v53_v37 = vshrl.u32 %v52_v12, 7  ;;  %s908_s7 = smov 1   ;;  %s909_s8 = smov 96  }
  0x29   :  { %v46_v9 = vld [vmem:[#allocation2 + $0x10] sm:$0xff]  ;;  %v970_v10 = vsub.f32 %v43_v6, %v47_v7  ;;  %s910_s9 = smov 32   ;;  %s911_s10 = smov 126  }
  0x2a   :  { %187 = vrot.lane.b32.xlu1 %v961_v3, %s903_s20  ;;  %168 = vrot.lane.b32.xlu0 %v963_v5, %s905_s6  ;;  %v973_v11 = vsub.f32 %v42_v8, %v46_v9  ;;  %v984_v14 = vadd.s32 128, %v981_v13  ;;  %vm58_vm1 = vcmp.ge.s32.totalorder %v981_v13, 16  ;;  %vm62_vm2 = vcmp.ge.s32.totalorder %v981_v13, 32  ;;  %s912_s11 = smov 2   ;;  %s913_s12 = smov 64  }
  0x2b   :  { %v60_v17 = vsel %vm58_vm1, 1, %v906_v15  ;;  %v64_v18 = vsel %vm62_vm2, 1, %v906_v15  ;;  %vm68_vm4 = vcmp.ge.s32.totalorder %v981_v13, 48  ;;  %vm74_vm6 = vcmp.ge.s32.totalorder %v981_v13, 64  ;;  %s914_s13 = smov 124   ;;  %s915_s14 = smov 4  }
  0x2c   :  { %vm105_vm0 = vcmp.ge.s32.totalorder %v984_v14, 144  ;;  %vm111_vm3 = vcmp.ge.s32.totalorder %v984_v14, 160  ;;  %vm117_vm5 = vcmp.ge.s32.totalorder %v984_v14, 176  ;;  %v66_v21 = vadd.s32 %v64_v18, %v60_v17  ;;  %s916_s15 = smov 120   ;;  %s917_s16 = smov 8  }
  0x2d   :  { %v107_v16 = vsel %vm105_vm0, 1, %v906_v15  ;;  %v113_v20 = vsel %vm111_vm3, 1, %v906_v15  ;;  %v70_v22 = vsel %vm68_vm4, 1, %v906_v15  ;;  %v119_v24 = vsel %vm117_vm5, 1, %v906_v15 }
  0x2e   :  { %193 = vrot.lane.b32.xlu1 %v963_v5, %s903_s20  ;;  %170 = vrot.lane.b32.xlu0 %v961_v3, %s905_s6  ;;  %v109_v19 = vadd.s32 8, %v107_v16  ;;  %vm123_vm7 = vcmp.ge.s32.totalorder %v984_v14, 192  ;;  %v72_v25 = vadd.s32 %v70_v22, %v66_v21  ;;  %v76_v26 = vsel %vm74_vm6, 1, %v906_v15 }
  0x2f   :  { %vm80_vm8 = vcmp.ge.s32.totalorder %v981_v13, 80  ;;  %v125_v28 = vsel %vm123_vm7, 1, %v906_v15  ;;  %vm129_vm9 = vcmp.ge.s32.totalorder %v984_v14, 208  ;;  %vm86_vm10 = vcmp.ge.s32.totalorder %v981_v13, 96 }
  0x30   :  { %v115_v23 = vadd.s32 %v113_v20, %v109_v19  ;;  %v78_v29 = vadd.s32 %v76_v26, %v72_v25  ;;  %v82_v30 = vsel %vm80_vm8, 1, %v906_v15  ;;  %v131_v32 = vsel %vm129_vm9, 1, %v906_v15 }
  0x31   :  { %vm135_vm11 = vcmp.ge.s32.totalorder %v984_v14, 224  ;;  %v88_v34 = vsel %vm86_vm10, 1, %v906_v15  ;;  %vm92_vm12 = vcmp.ge.s32.totalorder %v981_v13, 112  ;;  %vm141_vm13 = vcmp.ge.s32.totalorder %v984_v14, 240 }
  0x32   :  { %174 = vrot.lane.b32.xlu1 %v970_v10, %s905_s6  ;;  %172 = vrot.lane.b32.xlu0 %v973_v11, %s905_s6  ;;  %v121_v27 = vadd.s32 %v119_v24, %v115_v23  ;;  %v84_v33 = vadd.s32 %v82_v30, %v78_v29  ;;  %v137_v36 = vsel %vm135_vm11, 1, %v906_v15  ;;  %v94_v39 = vsel %vm92_vm12, 1, %v906_v15 }
  0x33   :  { %v143_v41 = vsel %vm141_vm13, 1, %v906_v15  ;;  %v146_v43 = vmul.u32 16, %v53_v37  ;;  %v1002_v46 = vadd.s32 8, %v53_v37  ;;  %vm234_vm4 = vcmask 1039360  }
  0x34   :  { %v127_v31 = vadd.s32 %v125_v28, %v121_v27  ;;  %v90_v38 = vadd.s32 %v88_v34, %v84_v33  ;;  %vm255_vm5 = vcmask 7168   ;;  %vm332_vm8 = vcmask 785408  }
  0x35   :  { %v147_v50 = vmul.u32 16, %v1002_v46  ;;  %vm353_vm9 = vcmask 261120  }
  0x36   :  { %195 = vrot.lane.b32.xlu1 %v973_v11, %s903_s20  ;;  %189 = vrot.lane.b32.xlu0 %v970_v10, %s903_s20  ;;  %v133_v35 = vadd.s32 %v131_v32, %v127_v31  ;;  %v96_v42 = vadd.s32 %v94_v39, %v90_v38  ;;  %v161_v32 = vand.u32 1, %v984_v14  ;;  %s919_s20 = smov [#allocation7]  }
  0x37   :  { %s790_s21 = sshll.u32 %s919_s20, 4  ;;  %s791_s21 = int_to_ptr.vmem [resolvable:$true] %s790_s21 }
  0x38   :  { %v139_v40 = vadd.s32 %v137_v36, %v133_v35  ;;  %v1000_v45 = vadd.s32 %v146_v43, %v96_v42  ;;  %v1013_v55 = vadd.s32 %v147_v50, %v96_v42  ;;  %vm1063_vm7 = vcmp.eq.s32.totalorder %v161_v32, 0  ;;  %s873_s24 = scalar_lea.vmem %s791_s21, 16  ;;  %s877_s25 = scalar_lea.vmem %s791_s21, 32 }
  0x39   :  { %p874_p2 = scmp.ne.s32.totalorder %s791_s21, %s873_s24  ;;  %p878_p3 = scmp.lt.s32.totalorder %s791_s21, %s791_s21 }
  0x3a   :  { %v145_v44 = vadd.s32 %v143_v41, %v139_v40  ;;  %v152_v49 = vand.u32 1, %v1000_v45  ;;  %v154_v15 = vand.u32 1, %v1013_v55  ;;  %v472_v20 = vand.u32 7, %v1000_v45  ;;  %p879_p4 = scmp.lt.s32.totalorder %s877_s25, %s873_s24 }
  0x3c   :  { %v1004_v47 = vadd.s32 %v146_v43, %v145_v44  ;;  %vm1009_vm0 = vcmp.eq.s32.totalorder %v152_v49, 0  ;;  %v1021_v60 = vadd.s32 %v147_v50, %v145_v44  ;;  %vm1037_vm2 = vcmp.eq.s32.totalorder %v154_v15, 0  ;;  %p880_p5 = por %p879_p4, %p878_p3 }
  0x3e   :  { %v153_v52 = vand.u32 1, %v1004_v47  ;;  %v155_v16 = vand.u32 1, %v1021_v60  ;;  %v473_v37 = vand.u32 7, %v1004_v47  ;;  %p881_p6 = pnand %p880_p5, %p874_p2 }
  0x40   :  { %vm1017_vm1 = vcmp.eq.s32.totalorder %v153_v52, 0  ;;  %vm1041_vm3 = vcmp.eq.s32.totalorder %v155_v16, 0  ;;  %v308_v16 = vand.u32 3, %v1000_v45 }
  0x42   :  { %vm1101_vm10 = vcmp.eq.s32.totalorder %v308_v16, 0 }
  0x9c   :  { %v188_v48 = vpop.permute.xlu1 %187  ;;  %v169_v51 = vpop.permute.xlu0 %168 }
  0xa0   :  { %v194_v53 = vpop.permute.xlu1 %193  ;;  %v171_v59 = vpop.permute.xlu0 %170 }
  0xa1   :  { %v198_v56 = vsel %vm197_vm14, %v194_v53, %v188_v48  ;;  %v204_v57 = vsel %vm197_vm14, %v188_v48, %v194_v53  ;;  %v177_v63 = vsel %vm176_vm15, %v169_v51, %v171_v59  ;;  %v185_v0 = vsel %vm176_vm15, %v171_v59, %v169_v51 }
  0xa2   :  { %v210_v61 = vsub.f32 %v204_v57, %v963_v5  ;;  %v211_v62 = vsub.f32 %v198_v56, %v961_v3  ;;  %v206_v1 = vadd.f32 %v177_v63, %v963_v5  ;;  %v207_v2 = vadd.f32 %v185_v0, %v961_v3 }
  0xa4   :  { %v175_v4 = vpop.permute.xlu1 %174  ;;  %v214_v6 = vsel %vm1009_vm0, %v206_v1, %v210_v61  ;;  %v215_v7 = vsel %vm1017_vm1, %v207_v2, %v211_v62  ;;  %v173_v8 = vpop.permute.xlu0 %172 }
  0xa5   :  { %v219_v9 = vmul.f32 0.70710677, %v215_v7  ;;  %v218_v12 = vmul.f32 0.70710677, %v214_v6  ;;  %v178_v17 = vsel %vm176_vm15, %v173_v8, %v175_v4  ;;  %v186_v5 = vsel %vm176_vm15, %v175_v4, %v173_v8 }
  0xa6   :  { %v208_v23 = vadd.f32 %v178_v17, %v973_v11  ;;  %v209_v24 = vadd.f32 %v186_v5, %v970_v10  ;;  %v309_v17 = vand.u32 3, %v1004_v47  ;;  %vm411_vm15 = vcmask 15360  }
  0xa7   :  { %228 = vrot.lane.b32.xlu1 %v219_v9, %s907_s1  ;;  %226 = vrot.lane.b32.xlu0 %v218_v12, %s907_s1 }
  0xa8   :  { %v196_v3 = vpop.permute.xlu1 %195  ;;  %v190_v18 = vpop.permute.xlu0 %189  ;;  %vm1105_vm11 = vcmp.eq.s32.totalorder %v309_v17, 0 }
  0xa9   :  { %v199_v21 = vsel %vm197_vm14, %v196_v3, %v190_v18  ;;  %v205_v22 = vsel %vm197_vm14, %v190_v18, %v196_v3  ;;  %vm390_vm14 = vcmask 1031168  }
  0xaa   :  { %v212_v25 = vsub.f32 %v205_v22, %v973_v11  ;;  %v213_v26 = vsub.f32 %v199_v21, %v970_v10  ;;  %v160_v10 = vand.u32 1, %v981_v13 }
  0xab   :  { %251 = vrot.lane.b32.xlu1 %v218_v12, %s908_s7  ;;  %245 = vrot.lane.b32.xlu0 %v219_v9, %s908_s7 }
  0xac   :  { %v216_v27 = vsel %vm1037_vm2, %v208_v23, %v212_v25  ;;  %v217_v28 = vsel %vm1041_vm3, %v209_v24, %v213_v26  ;;  %vm1059_vm6 = vcmp.eq.s32.totalorder %v160_v10, 0  ;;  %v1775_v23 = vmov 0 }
  0xad   :  { %v220_v29 = vmul.f32 0.70710677, %v216_v27  ;;  %v221_v30 = vmul.f32 0.70710677, %v217_v28 }
  0xaf   :  { %230 = vrot.lane.b32.xlu0 %v220_v29, %s907_s1  ;;  %232 = vrot.lane.b32.xlu1 %v221_v30, %s907_s1 }
  0xb3   :  { %247 = vrot.lane.b32.xlu0 %v221_v30, %s908_s7  ;;  %253 = vrot.lane.b32.xlu1 %v220_v29, %s908_s7 }
 0x119   :  { %v229_v31 = vpop.permute.xlu1 %228  ;;  %v227_v11 = vpop.permute.xlu0 %226 }
 0x11a   :  { %v235_v33 = vsel %vm234_vm4, %v227_v11, %v229_v31  ;;  %v243_v34 = vsel %vm234_vm4, %v229_v31, %v227_v11 }
 0x11b   :  { %v264_v41 = vadd.f32 %v235_v33, %v218_v12  ;;  %v265_v42 = vadd.f32 %v243_v34, %v219_v9  ;;  %v310_v34 = vand.u32 3, %v1013_v55 }
 0x11d   :  { %v252_v35 = vpop.permute.xlu1 %251  ;;  %v246_v36 = vpop.permute.xlu0 %245  ;;  %vm1123_vm12 = vcmp.eq.s32.totalorder %v310_v34, 0 }
 0x11e   :  { %v256_v39 = vsel %vm255_vm5, %v252_v35, %v246_v36  ;;  %v262_v40 = vsel %vm255_vm5, %v246_v36, %v252_v35  ;;  %v311_v35 = vand.u32 3, %v1021_v60 }
 0x11f   :  { %v268_v43 = vsub.f32 %v262_v40, %v218_v12  ;;  %v269_v44 = vsub.f32 %v256_v39, %v219_v9 }
 0x120   :  { %vm1127_vm13 = vcmp.eq.s32.totalorder %v311_v35, 0 }
 0x121   :  { %v272_v48 = vsel %vm1059_vm6, %v264_v41, %v268_v43  ;;  %v273_v49 = vsel %vm1063_vm7, %v265_v42, %v269_v44  ;;  %v233_v50 = vpop.permute.xlu1 %232  ;;  %v231_v51 = vpop.permute.xlu0 %230  ;;  %v1787_v43 = vmov 0 }
 0x122   :  { %v1073_v52 = vmul.f32 0.70710677, %v272_v48  ;;  %v1075_v53 = vmul.f32 0.70710677, %v273_v49  ;;  %v236_v56 = vsel %vm234_vm4, %v231_v51, %v233_v50  ;;  %v244_v57 = vsel %vm234_vm4, %v233_v50, %v231_v51 }
 0x123   :  { %v266_v0 = vadd.f32 %v236_v56, %v220_v29  ;;  %v267_v1 = vadd.f32 %v244_v57, %v221_v30 }
 0x124   :  { %324 = vrot.lane.b32.xlu0 %v1073_v52, %s909_s8  ;;  %326 = vrot.lane.b32.xlu1 %v1075_v53, %s909_s8 }
 0x125   :  { %v254_v59 = vpop.permute.xlu1 %253  ;;  %v248_v61 = vpop.permute.xlu0 %247 }
 0x126   :  { %v257_v62 = vsel %vm255_vm5, %v254_v59, %v248_v61  ;;  %v263_v63 = vsel %vm255_vm5, %v248_v61, %v254_v59 }
 0x127   :  { %v270_v2 = vsub.f32 %v263_v63, %v220_v29  ;;  %v271_v4 = vsub.f32 %v257_v62, %v221_v30 }
 0x128   :  { %343 = vrot.lane.b32.xlu0 %v1075_v53, %s910_s9  ;;  %349 = vrot.lane.b32.xlu1 %v1073_v52, %s910_s9 }
 0x129   :  { %v274_v6 = vsel %vm1059_vm6, %v266_v0, %v270_v2  ;;  %v275_v7 = vsel %vm1063_vm7, %v267_v1, %v271_v4  ;;  %v316_v1 = vand.u32 3, %v981_v13  ;;  %v317_v2 = vand.u32 3, %v984_v14 }
 0x12a   :  { %v1089_v8 = vmul.f32 0.70710677, %v274_v6  ;;  %v1091_v9 = vmul.f32 0.70710677, %v275_v7 }
 0x12b   :  { %vm1145_vm4 = vcmp.eq.s32.totalorder %v316_v1, 0  ;;  %vm1149_vm5 = vcmp.eq.s32.totalorder %v317_v2, 0 }
 0x12c   :  { %328 = vrot.lane.b32.xlu0 %v1089_v8, %s909_s8  ;;  %330 = vrot.lane.b32.xlu1 %v1091_v9, %s909_s8 }
 0x130   :  { %345 = vrot.lane.b32.xlu0 %v1091_v9, %s910_s9  ;;  %351 = vrot.lane.b32.xlu1 %v1089_v8, %s910_s9 }
 0x196   :  { %v327_v12 = vpop.permute.xlu1 %326  ;;  %v325_v15 = vpop.permute.xlu0 %324 }
 0x197   :  { %v333_v5 = vsel %vm332_vm8, %v325_v15, %v327_v12  ;;  %v341_v3 = vsel %vm332_vm8, %v327_v12, %v325_v15  ;;  %v1785_v15 = vmov 0 }
 0x198   :  { %v362_v26 = vadd.f32 %v333_v5, %v1073_v52  ;;  %v363_v27 = vadd.f32 %v341_v3, %v1075_v53 }
 0x19a   :  { %v350_v18 = vpop.permute.xlu1 %349  ;;  %v344_v21 = vpop.permute.xlu0 %343 }
 0x19b   :  { %v354_v24 = vsel %vm353_vm9, %v350_v18, %v344_v21  ;;  %v360_v25 = vsel %vm353_vm9, %v344_v21, %v350_v18 }
 0x19c   :  { %v366_v28 = vsub.f32 %v360_v25, %v1073_v52  ;;  %v367_v29 = vsub.f32 %v354_v24, %v1075_v53 }
 0x19e   :  { %v370_v30 = vsel %vm1101_vm10, %v362_v26, %v366_v28  ;;  %v371_v31 = vsel %vm1105_vm11, %v363_v27, %v367_v29  ;;  %v331_v11 = vpop.permute.xlu1 %330  ;;  %v329_v10 = vpop.permute.xlu0 %328 }
 0x19f   :  { %v374_v32 = vmul.f32 0.70710677, %v370_v30  ;;  %v375_v33 = vmul.f32 0.70710677, %v371_v31  ;;  %v334_v36 = vsel %vm332_vm8, %v329_v10, %v331_v11  ;;  %v342_v39 = vsel %vm332_vm8, %v331_v11, %v329_v10  ;;  %vm1163_vm8 = vmand %vm1009_vm0, %vm1059_vm6 }
 0x1a0   :  { %v364_v49 = vadd.f32 %v334_v36, %v1089_v8  ;;  %v365_v50 = vadd.f32 %v342_v39, %v1091_v9  ;;  %vm1199_vm0 = vmand %vm1037_vm2, %vm1059_vm6  ;;  %vm496_vm2 = vcmask 523264   ;;  %vm1229_vm6 = vcmp.eq.s32.totalorder %v473_v37, 0 }
 0x1a1   :  { %382 = vrot.lane.b32.xlu0 %v374_v32, %s911_s10  ;;  %384 = vrot.lane.b32.xlu1 %v375_v33, %s911_s10 }
 0x1a2   :  { %v352_v40 = vpop.permute.xlu1 %351  ;;  %v346_v41 = vpop.permute.xlu0 %345 }
 0x1a3   :  { %v355_v44 = vsel %vm353_vm9, %v352_v40, %v346_v41  ;;  %v361_v48 = vsel %vm353_vm9, %v346_v41, %v352_v40  ;;  %vm1171_vm9 = vmand %vm1017_vm1, %vm1063_vm7 }
 0x1a4   :  { %v368_v51 = vsub.f32 %v361_v48, %v1089_v8  ;;  %v369_v56 = vsub.f32 %v355_v44, %v1091_v9  ;;  %vm1207_vm1 = vmand %vm1041_vm3, %vm1063_vm7  ;;  %vm1225_vm3 = vcmp.eq.s32.totalorder %v472_v20, 0 }
 0x1a5   :  { %401 = vrot.lane.b32.xlu0 %v375_v33, %s912_s11  ;;  %407 = vrot.lane.b32.xlu1 %v374_v32, %s912_s11 }
 0x1a6   :  { %v372_v57 = vsel %vm1123_vm12, %v364_v49, %v368_v51  ;;  %v373_v59 = vsel %vm1127_vm13, %v365_v50, %v369_v56  ;;  %v1753_v56 = vmov 0 }
 0x1a7   :  { %v376_v61 = vmul.f32 0.70710677, %v372_v57  ;;  %v377_v62 = vmul.f32 0.70710677, %v373_v59  ;;  %v1754_v56 = vsel %vm1199_vm0, 4294967295, %v1753_v56  ;;  %v1755_v57 = vmov 0 }
 0x1a8   :  { %v1756_v57 = vsel %vm1207_vm1, 4294967295, %v1755_v57 }
 0x1a9   :  { %386 = vrot.lane.b32.xlu0 %v376_v61, %s911_s10  ;;  %388 = vrot.lane.b32.xlu1 %v377_v62, %s911_s10 }
 0x1ad   :  { %403 = vrot.lane.b32.xlu0 %v377_v62, %s912_s11  ;;  %409 = vrot.lane.b32.xlu1 %v376_v61, %s912_s11 }
 0x213   :  { %v385_v63 = vpop.permute.xlu1 %384  ;;  %v383_v0 = vpop.permute.xlu0 %382 }
 0x214   :  { %v391_v4 = vsel %vm390_vm14, %v383_v0, %v385_v63  ;;  %v399_v6 = vsel %vm390_vm14, %v385_v63, %v383_v0  ;;  %v1759_v63 = vmov 0 }
 0x215   :  { %v420_v3 = vadd.f32 %v391_v4, %v374_v32  ;;  %v421_v18 = vadd.f32 %v399_v6, %v375_v33  ;;  %v1760_v63 = vsel %vm1229_vm6, 4294967295, %v1759_v63 }
 0x217   :  { %v408_v7 = vpop.permute.xlu1 %407  ;;  %v402_v12 = vpop.permute.xlu0 %401 }
 0x218   :  { %v412_v17 = vsel %vm411_vm15, %v408_v7, %v402_v12  ;;  %v418_v5 = vsel %vm411_vm15, %v402_v12, %v408_v7 }
 0x219   :  { %v424_v21 = vsub.f32 %v418_v5, %v374_v32  ;;  %v425_v24 = vsub.f32 %v412_v17, %v375_v33 }
 0x21b   :  { %v428_v25 = vsel %vm1145_vm4, %v420_v3, %v424_v21  ;;  %v429_v26 = vsel %vm1149_vm5, %v421_v18, %v425_v24  ;;  %v389_v27 = vpop.permute.xlu1 %388  ;;  %v387_v28 = vpop.permute.xlu0 %386  ;;  %v474_v18 = vand.u32 7, %v1013_v55  ;;  %v475_v21 = vand.u32 7, %v1021_v60 }
 0x21c   :  { %v432_v29 = vmul.f32 0.70710677, %v428_v25  ;;  %v433_v30 = vmul.f32 0.70710677, %v429_v26  ;;  %v392_v10 = vsel %vm390_vm14, %v387_v28, %v389_v27  ;;  %v400_v32 = vsel %vm390_vm14, %v389_v27, %v387_v28 }
 0x21d   :  { %v422_v39 = vadd.f32 %v392_v10, %v376_v61  ;;  %v423_v40 = vadd.f32 %v400_v32, %v377_v62  ;;  %vm1245_vm7 = vcmp.eq.s32.totalorder %v474_v18, 0  ;;  %v1761_v26 = vmov 0 }
 0x21e   :  { %v1180_v54 = vsel %vm1163_vm8, %v432_v29, %v1073_v52  ;;  %v1185_v33 = vsel %vm1171_vm9, %v433_v30, %v1075_v53  ;;  %v1762_v26 = vsel %vm1245_vm7, 4294967295, %v1761_v26  ;;  %vm1249_vm14 = vcmp.eq.s32.totalorder %v475_v21, 0 }
 0x21f   :  { %v410_v34 = vpop.permute.xlu1 %409  ;;  %488 = vrot.lane.b32.xlu0 %v1180_v54, %s913_s12  ;;  %490 = vrot.lane.b32.xlu1 %v1185_v33, %s913_s12  ;;  %v404_v58 = vpop.permute.xlu0 %403  ;;  %v1763_v27 = vmov 0 }
 0x220   :  { %v413_v35 = vsel %vm411_vm15, %v410_v34, %v404_v58  ;;  %v419_v36 = vsel %vm411_vm15, %v404_v58, %v410_v34  ;;  %v1764_v27 = vsel %vm1249_vm14, 4294967295, %v1763_v27  ;;  %vm1704_vm15 = vcmask 1014784  }
 0x221   :  { %v426_v41 = vsub.f32 %v419_v36, %v376_v61  ;;  %v427_v44 = vsub.f32 %v413_v35, %v377_v62  ;;  %v1804_v62 = vmov 0 }
 0x223   :  { %v430_v48 = vsel %vm1145_vm4, %v422_v39, %v426_v41  ;;  %v431_v49 = vsel %vm1149_vm5, %v423_v40, %v427_v44  ;;  %v480_v44 = vand.u32 7, %v981_v13 }
 0x224   :  { %v434_v50 = vmul.f32 0.70710677, %v430_v48  ;;  %v435_v51 = vmul.f32 0.70710677, %v431_v49  ;;  %v481_v48 = vand.u32 7, %v984_v14 }
 0x226   :  { %v1214_v59 = vsel %vm1199_vm0, %v434_v50, %v1089_v8  ;;  %v1219_v19 = vsel %vm1207_vm1, %v435_v51, %v1091_v9  ;;  %vm1267_vm1 = vcmp.eq.s32.totalorder %v480_v44, 0 }
 0x227   :  { %492 = vrot.lane.b32.xlu0 %v1214_v59, %s913_s12  ;;  %494 = vrot.lane.b32.xlu1 %v1219_v19, %s913_s12 }
 0x291   :  { %v491_v38 = vpop.permute.xlu1 %490  ;;  %v489_v61 = vpop.permute.xlu0 %488 }
 0x292   :  { %v497_v0 = vsel %vm496_vm2, %v489_v61, %v491_v38  ;;  %v505_v1 = vsel %vm496_vm2, %v491_v38, %v489_v61 }
 0x293   :  { %v507_v2 = vadd.f32 %v497_v0, %v1180_v54  ;;  %v508_v4 = vadd.f32 %v505_v1, %v1185_v33  ;;  %v511_v6 = vsub.f32 %v505_v1, %v1180_v54  ;;  %v512_v7 = vsub.f32 %v497_v0, %v1185_v33 }
 0x295   :  { %v515_v12 = vsel %vm1225_vm3, %v507_v2, %v511_v6  ;;  %v516_v17 = vsel %vm1229_vm6, %v508_v4, %v512_v7  ;;  %v618_v7 = vand.u32 15, %v1004_v47 }
 0x296   :  { %v520_v5 = vmul.f32 0.70710677, %v516_v17  ;;  %v519_v3 = vmul.f32 0.70710677, %v515_v12  ;;  %v617_v12 = vand.u32 15, %v1000_v45  ;;  %v1771_v45 = vmov 0 }
 0x298   :  { %529 = vrot.lane.b32.xlu1 %v520_v5, %s914_s13  ;;  %527 = vrot.lane.b32.xlu0 %v519_v3, %s914_s13 }
 0x299   :  { %v495_v24 = vpop.permute.xlu1 %494  ;;  %v493_v25 = vpop.permute.xlu0 %492 }
 0x29a   :  { %v498_v28 = vsel %vm496_vm2, %v493_v25, %v495_v24  ;;  %v506_v29 = vsel %vm496_vm2, %v495_v24, %v493_v25  ;;  %vm1703_vm2 = vcmask 31744  }
 0x29b   :  { %v509_v30 = vadd.f32 %v498_v28, %v1214_v59  ;;  %v510_v10 = vadd.f32 %v506_v29, %v1219_v19  ;;  %v513_v32 = vsub.f32 %v506_v29, %v1214_v59  ;;  %v514_v34 = vsub.f32 %v498_v28, %v1219_v19 }
 0x29c   :  { %552 = vrot.lane.b32.xlu1 %v519_v3, %s915_s14  ;;  %546 = vrot.lane.b32.xlu0 %v520_v5, %s915_s14 }
 0x29d   :  { %v517_v58 = vsel %vm1245_vm7, %v509_v30, %v513_v32  ;;  %v518_v35 = vsel %vm1249_vm14, %v510_v10, %v514_v34  ;;  %vm1271_vm14 = vcmp.eq.s32.totalorder %v481_v48, 0  ;;  %vm1773_vm7 = vcmask 1014784  }
 0x29e   :  { %v522_v36 = vmul.f32 0.70710677, %v518_v35  ;;  %v521_v39 = vmul.f32 0.70710677, %v517_v58  ;;  %vm1774_vm6 = vmmov %vm1773_vm7  ;;  %v1777_v30 = vmov 0 }
 0x2a0   :  { %533 = vrot.lane.b32.xlu1 %v522_v36, %s914_s13  ;;  %531 = vrot.lane.b32.xlu0 %v521_v39, %s914_s13 }
 0x2a4   :  { %554 = vrot.lane.b32.xlu1 %v521_v39, %s915_s14  ;;  %548 = vrot.lane.b32.xlu0 %v522_v36, %s915_s14 }
 0x30a   :  { %v530_v40 = vpop.permute.xlu1 %529  ;;  %v528_v41 = vpop.permute.xlu0 %527 }
 0x30b   :  { %v536_v49 = vsel %vm1704_vm15, %v528_v41, %v530_v40  ;;  %v544_v50 = vsel %vm1704_vm15, %v530_v40, %v528_v41  ;;  %vm1295_vm15 = vmand %vm1105_vm11, %vm1149_vm5  ;;  %vm1315_vm11 = vcmp.eq.s32.totalorder %v617_v12, 0 }
 0x30c   :  { %v565_v1 = vadd.f32 %v536_v49, %v519_v3  ;;  %v566_v2 = vadd.f32 %v544_v50, %v520_v5  ;;  %v1772_v45 = vsel %vm1295_vm15, 4294967295, %v1771_v45  ;;  %v1778_v30 = vsel %vm1315_vm11, 4294967295, %v1777_v30 }
 0x30e   :  { %v553_v51 = vpop.permute.xlu1 %552  ;;  %v547_v20 = vpop.permute.xlu0 %546 }
 0x30f   :  { %v557_v61 = vsel %vm1703_vm2, %v553_v51, %v547_v20  ;;  %v563_v0 = vsel %vm1703_vm2, %v547_v20, %v553_v51  ;;  %vm1287_vm2 = vmand %vm1101_vm10, %vm1145_vm4  ;;  %vm1311_vm10 = vcmp.eq.s32.totalorder %v618_v7, 0 }
 0x310   :  { %v569_v4 = vsub.f32 %v563_v0, %v519_v3  ;;  %v570_v6 = vsub.f32 %v557_v61, %v520_v5  ;;  %v1776_v23 = vsel %vm1311_vm10, 4294967295, %v1775_v23 }
 0x312   :  { %v573_v17 = vsel %vm1267_vm1, %v565_v1, %v569_v4  ;;  %v574_v18 = vsel %vm1271_vm14, %v566_v2, %v570_v6  ;;  %v534_v21 = vpop.permute.xlu1 %533  ;;  %v532_v24 = vpop.permute.xlu0 %531  ;;  %v620_v1 = vand.u32 15, %v1021_v60  ;;  %v619_v2 = vand.u32 15, %v1013_v55 }
 0x313   :  { %v577_v5 = vmul.f32 0.70710677, %v573_v17  ;;  %v578_v47 = vmul.f32 0.70710677, %v574_v18  ;;  %v537_v3 = vsel %vm1773_vm7, %v532_v24, %v534_v21  ;;  %v545_v28 = vsel %vm1774_vm6, %v534_v21, %v532_v24 }
 0x314   :  { %v567_v40 = vadd.f32 %v537_v3, %v521_v39  ;;  %v568_v41 = vadd.f32 %v545_v28, %v522_v36  ;;  %vm1779_vm6 = vcmask 31744   ;;  %v1783_v55 = vmov 0 }
 0x315   :  { %v1304_v22 = vsel %vm1287_vm2, %v577_v5, %v1180_v54  ;;  %v1309_v29 = vsel %vm1295_vm15, %v578_v47, %v1185_v33  ;;  %vm1780_vm7 = vmmov %vm1779_vm6  ;;  %v1791_v3 = vmov 0 }
 0x316   :  { %v555_v10 = vpop.permute.xlu1 %554  ;;  %v549_v32 = vpop.permute.xlu0 %548  ;;  %v629_v34 = vadd.f32 %v1309_v29, %v1304_v22  ;;  %v632_v58 = vsub.f32 %v1304_v22, %v1309_v29  ;;  %v631_v35 = vsub.f32 %v1309_v29, %v1304_v22  ;;  %v597_v37 = vand.u32 2147483647, %v1304_v22 }
 0x317   :  { %v558_v44 = vsel %vm1779_vm6, %v555_v10, %v549_v32  ;;  %v564_v48 = vsel %vm1780_vm7, %v549_v32, %v555_v10  ;;  %vm1345_vm6 = vmand %vm1123_vm12, %vm1145_vm4  ;;  %vm1369_vm12 = vcmp.eq.s32.totalorder %v620_v1, 0  ;;  %vm1373_vm4 = vcmp.eq.s32.totalorder %v619_v2, 0 }
 0x318   :  { %v571_v49 = vsub.f32 %v564_v48, %v521_v39  ;;  %v572_v50 = vsub.f32 %v558_v44, %v522_v36  ;;  %v636_v51 = vsel %vm1311_vm10, %v629_v34, %v632_v58  ;;  %v635_v20 = vsel %vm1315_vm11, %v629_v34, %v631_v35  ;;  %vm1355_vm7 = vmand %vm1127_vm13, %vm1149_vm5 }
 0x319   :  { %v1331_v61 = vmul.f32 0.70710677, %v636_v51  ;;  %v1333_v0 = vmul.f32 0.70710677, %v635_v20  ;;  %v1784_v55 = vsel %vm1355_vm7, 4294967295, %v1783_v55  ;;  %v1786_v15 = vsel %vm1369_vm12, 4294967295, %v1785_v15 }
 0x31a   :  { %v575_v4 = vsel %vm1267_vm1, %v567_v40, %v571_v49  ;;  %v576_v36 = vsel %vm1271_vm14, %v568_v41, %v572_v50  ;;  %v1788_v43 = vsel %vm1373_vm4, 4294967295, %v1787_v43  ;;  %vm1721_vm13 = vmmov 1  }
 0x31b   :  { %v579_v6 = vmul.f32 0.70710677, %v575_v4  ;;  %v580_v7 = vmul.f32 0.70710677, %v576_v36  ;;  %649 = vrot.lane.b32.xlu1 %v1331_v61, %s916_s15  ;;  %647 = vrot.lane.b32.xlu0 %v1333_v0, %s916_s15  ;;  %vm1400_vm5 = vmxor %vm1163_vm8, %vm1721_vm13  ;;  %v1795_v10 = vmov 0  ;;  %v1797_v32 = vmov 0 }
 0x31c   :  { %vm1421_vm10 = vmxor %vm1295_vm15, %vm1721_vm13  ;;  %v1799_v34 = vmov 0  ;;  %v288_v35 = vand.u32 2147483647, %v1073_v52  ;;  %v289_v40 = vand.u32 2147483647, %v1075_v53 }
 0x31d   :  { %v1362_v60 = vsel %vm1345_vm6, %v579_v6, %v1214_v59  ;;  %v1367_v42 = vsel %vm1355_vm7, %v580_v7, %v1219_v19  ;;  %v1796_v10 = vsel %vm1421_vm10, 4294967295, %v1795_v10  ;;  %vm1428_vm11 = vmxor %vm1199_vm0, %vm1721_vm13  ;;  %v290_v44 = vand.u32 2147483647, %v1089_v8 }
 0x31e   :  { %v630_v16 = vadd.f32 %v1367_v42, %v1362_v60  ;;  %v634_v12 = vsub.f32 %v1362_v60, %v1367_v42  ;;  %v633_v17 = vsub.f32 %v1367_v42, %v1362_v60  ;;  %v1798_v32 = vsel %vm1428_vm11, 4294967295, %v1797_v32  ;;  %vm1436_vm7 = vmand %vm1225_vm3, %vm1267_vm1 }
 0x31f   :  { %672 = vrot.lane.b32.xlu1 %v1333_v0, %s917_s16  ;;  %666 = vrot.lane.b32.xlu0 %v1331_v61, %s917_s16  ;;  %v1800_v34 = vsel %vm1436_vm7, 4294967295, %v1799_v34  ;;  %vm1443_vm15 = vmxor %vm1345_vm6, %vm1721_vm13  ;;  %vm1803_vm11 = vnez %v1760_v63  ;;  %vm1808_vm3 = vnez %v1762_v26  ;;  %v1809_v63 = vmov 0 }
 0x320   :  { %v638_v18 = vsel %vm1369_vm12, %v630_v16, %v634_v12  ;;  %v637_v21 = vsel %vm1373_vm4, %v630_v16, %v633_v17  ;;  %vm1407_vm12 = vmxor %vm1171_vm9, %vm1721_vm13  ;;  %v292_v53 = vsel %vm1400_vm5, %v288_v35, 0.0  ;;  %v598_v48 = vand.u32 2147483647, %v1309_v29 }
 0x321   :  { %v1389_v24 = vmul.f32 0.70710677, %v638_v18  ;;  %v1391_v5 = vmul.f32 0.70710677, %v637_v21  ;;  %v1792_v3 = vsel %vm1407_vm12, 4294967295, %v1791_v3  ;;  %vm1414_vm4 = vmxor %vm1287_vm2, %vm1721_vm13  ;;  %vm1817_vm5 = vnez %v1798_v32 }
 0x322   :  { %vm1459_vm12 = vmand %vm1803_vm11, %vm1271_vm14  ;;  %v452_v49 = vand.u32 2147483647, %v1180_v54  ;;  %v453_v50 = vand.u32 2147483647, %v1185_v33  ;;  %v294_v51 = vsel %vm1817_vm5, %v290_v44, 0.0 }
 0x323   :  { %653 = vrot.lane.b32.xlu1 %v1389_v24, %s916_s15  ;;  %651 = vrot.lane.b32.xlu0 %v1391_v5, %s916_s15  ;;  %v1805_v62 = vsel %vm1459_vm12, 4294967295, %v1804_v62  ;;  %vm1468_vm0 = vmxor %vm1436_vm7, %vm1721_vm13  ;;  %vm1816_vm7 = vnez %v1772_v45  ;;  %v599_v1 = vand.u32 2147483647, %v1362_v60  ;;  %v454_v54 = vand.u32 2147483647, %v1214_v59 }
 0x324   :  { %vm1476_vm10 = vmand %vm1808_vm3, %vm1267_vm1  ;;  %vm1813_vm1 = vnez %v1792_v3  ;;  %v291_v33 = vand.u32 2147483647, %v1091_v9  ;;  %v600_v11 = vand.u32 2147483647, %v1367_v42  ;;  %v455_v16 = vand.u32 2147483647, %v1219_v19 }
 0x325   :  { %v1810_v63 = vsel %vm1476_vm10, 4294967295, %v1809_v63  ;;  %vm1484_vm11 = vmxor %vm1459_vm12, %vm1721_vm13  ;;  %v293_v26 = vsel %vm1813_vm1, %v289_v40, 0.0  ;;  %vm1818_vm1 = vnez %v1764_v27  ;;  %v625_v3 = vand.u32 15, %v981_v13 }
 0x326   :  { %vm1499_vm3 = vmxor %vm1476_vm10, %vm1721_vm13  ;;  %v296_v2 = vadd.f32 %v293_v26, %v292_v53  ;;  %vm1824_vm10 = vnez %v1756_v57 }
 0x327   :  { %674 = vrot.lane.b32.xlu1 %v1391_v5, %s917_s16  ;;  %668 = vrot.lane.b32.xlu0 %v1389_v24, %s917_s16  ;;  %vm594_vm12 = vmand %vm1816_vm7, %vm1484_vm11  ;;  %vm1822_vm11 = vnez %v1754_v56 }
 0x328   :  { %vm1517_vm13 = vmand %vm1818_vm1, %vm1271_vm14  ;;  %v602_v38 = vsel %vm594_vm12, %v598_v48, 0.0  ;;  %vm1823_vm1 = vmmov 1   ;;  %v297_v45 = vadd.f32 %v296_v2, %v294_v51  ;;  %vm1830_vm12 = vnez %v1784_v55 }
 0x329   :  { %vm595_vm7 = vmand %vm1345_vm6, %vm1499_vm3 }
 0x32a   :  { %vm1821_vm14 = vmand %vm1287_vm2, %vm1468_vm0  ;;  %vm1826_vm0 = vnez %v1796_v10  ;;  %v603_v25 = vsel %vm595_vm7, %v599_v1, 0.0  ;;  %vm655_vm7 = vcmask 982016   ;;  %v626_v10 = vand.u32 15, %v984_v14 }
 0x32b   :  { %v601_v27 = vsel %vm1821_vm14, %v597_v37, 0.0  ;;  %vm450_vm5 = vmand %vm1822_vm11, %vm1443_vm15  ;;  %vm676_vm14 = vcmask 64512  }
 0x32c   :  { %vm287_vm6 = vmxor %vm1824_vm10, %vm1823_vm1  ;;  %v605_v4 = vadd.f32 %v602_v38, %v601_v27  ;;  %v458_v31 = vsel %vm450_vm5, %v454_v54, 0.0  ;;  %vm1576_vm11 = vcmp.eq.s32.totalorder %v626_v10, 0  ;;  %vm1835_vm5 = vnez %v1778_v30 }
 0x32d   :  { %vm1825_vm3 = vmand %vm1163_vm8, %vm1414_vm4  ;;  %v295_v36 = vsel %vm287_vm6, %v291_v33, 0.0 }
 0x32e   :  { %v456_v9 = vsel %vm1825_vm3, %v452_v49, 0.0  ;;  %vm1827_vm2 = vmand %vm1171_vm9, %vm1826_vm0  ;;  %v298_v6 = vadd.f32 %v297_v45, %v295_v36  ;;  %v606_v7 = vadd.f32 %v605_v4, %v603_v25  ;;  %vm1836_vm3 = vnez %v1776_v23 }
 0x32f   :  { %v457_v59 = vsel %vm1827_vm2, %v453_v50, 0.0  ;;  %vm1553_vm15 = vmxor %vm1517_vm13, %vm1823_vm1 }
 0x330   :  { %vm447_vm8 = vmxor %vm1830_vm12, %vm1823_vm1  ;;  %v460_v39 = vadd.f32 %v457_v59, %v456_v9 }
 0x331   :  { %vm596_vm9 = vmand %vm1830_vm12, %vm1553_vm15  ;;  %vm1841_vm12 = vnez %v1800_v34 }
 0x332   :  { %vm451_vm4 = vmand %vm1824_vm10, %vm447_vm8  ;;  %v461_v12 = vadd.f32 %v460_v39, %v458_v31  ;;  %v604_v17 = vsel %vm596_vm9, %v600_v11, 0.0  ;;  %vm1572_vm10 = vcmp.eq.s32.totalorder %v625_v3, 0  ;;  %vm1842_vm9 = vnez %v1805_v62 }
 0x333   :  { %v607_v18 = vadd.f32 %v606_v7, %v604_v17  ;;  %v459_v21 = vsel %vm451_vm4, %v455_v16, 0.0  ;;  %vm705_vm6 = vmand %vm1835_vm5, %vm1572_vm10 }
 0x334   :  { %v462_v47 = vadd.f32 %v461_v12, %v459_v21  ;;  %vm706_vm0 = vmand %vm1836_vm3, %vm1576_vm11  ;;  %vm1844_vm3 = vnez %v1786_v15 }
 0x335   :  { %vm1595_vm2 = vmxor %vm705_vm6, %vm1823_vm1  ;;  %vm742_vm6 = vcmp.ge.s32.totalorder %v1002_v46, 12 }
 0x336   :  { %vm1604_vm15 = vmxor %vm706_vm0, %vm1823_vm1 }
 0x337   :  { %vm713_vm8 = vmand %vm1841_vm12, %vm1595_vm2 }
 0x338   :  { %vm714_vm4 = vmand %vm1842_vm9, %vm1604_vm15 }
 0x339   :  { %vm708_vm0 = vmand %vm1844_vm3, %vm1576_vm11 }
 0x33a   :  { %vm751_vm15 = vmand %vm708_vm0, %vm742_vm6 }
 0x346   :  { %299 = vadd.xlane.f32.xlu0 %v298_v6 }
 0x34a   :  { %608 = vadd.xlane.f32.xlu0 %v607_v18 }
 0x34b   :  { %463 = vadd.xlane.f32.xlu1 %v462_v47 }
 0x38d   :  { %v650_v28 = vpop.permute.xlu1 %649  ;;  %v648_v55 = vpop.permute.xlu0 %647 }
 0x38e   :  { %v656_v19 = vsel %vm655_vm7, %v648_v55, %v650_v28  ;;  %v664_v57 = vsel %vm655_vm7, %v650_v28, %v648_v55 }
 0x38f   :  { %v685_v44 = vadd.f32 %v656_v19, %v1333_v0  ;;  %v686_v52 = vadd.f32 %v664_v57, %v1331_v61 }
 0x391   :  { %v673_v58 = vpop.permute.xlu1 %672  ;;  %v667_v40 = vpop.permute.xlu0 %666 }
 0x392   :  { %v677_v14 = vsel %vm676_vm14, %v673_v58, %v667_v40  ;;  %v683_v41 = vsel %vm676_vm14, %v667_v40, %v673_v58 }
 0x393   :  { %v689_v53 = vsub.f32 %v683_v41, %v1333_v0  ;;  %v690_v26 = vsub.f32 %v677_v14, %v1331_v61 }
 0x395   :  { %v693_v8 = vsel %vm1572_vm10, %v685_v44, %v689_v53  ;;  %v694_v23 = vsel %vm1576_vm11, %v686_v52, %v690_v26  ;;  %v654_v37 = vpop.permute.xlu1 %653  ;;  %v652_v48 = vpop.permute.xlu0 %651 }
 0x396   :  { %v697_v0 = vmul.f32 0.70710677, %v693_v8  ;;  %v698_v61 = vmul.f32 0.70710677, %v694_v23  ;;  %v657_v50 = vsel %vm655_vm7, %v652_v48, %v654_v37  ;;  %v665_v51 = vsel %vm655_vm7, %v654_v37, %v652_v48 }
 0x397   :  { %vm1843_vm7 = vnez %v1788_v43  ;;  %v687_v38 = vadd.f32 %v657_v50, %v1391_v5 }
 0x398   :  { %v701_v1 = vsel %vm1841_vm12, %v697_v0, %v1304_v22  ;;  %v702_v2 = vsel %vm1842_vm9, %v698_v61, %v1309_v29  ;;  %vm707_vm5 = vmand %vm1843_vm7, %vm1572_vm10  ;;  %v688_v29 = vadd.f32 %v665_v51, %v1389_v24  ;;  %vm774_vm9 = vcmp.eq.s32.totalorder %v981_v13, 2 }
 0x399   :  { %v675_v54 = vpop.permute.xlu1 %674  ;;  %v669_v33 = vpop.permute.xlu0 %668  ;;  %v717_v27 = vand.u32 2147483647, %v701_v1  ;;  %v718_v22 = vand.u32 2147483647, %v702_v2  ;;  %vm750_vm2 = vmand %vm707_vm5, %vm742_vm6  ;;  %vm780_vm7 = vcmp.eq.s32.totalorder %v981_v13, 4 }
 0x39a   :  { %v678_v45 = vsel %vm676_vm14, %v675_v54, %v669_v33  ;;  %v684_v62 = vsel %vm676_vm14, %v669_v33, %v675_v54  ;;  %vm1650_vm14 = vmxor %vm707_vm5, %vm1823_vm1 }
 0x39b   :  { %v691_v9 = vsub.f32 %v684_v62, %v1391_v5  ;;  %v692_v59 = vsub.f32 %v678_v45, %v1389_v24  ;;  %v721_v56 = vsel %vm713_vm8, %v717_v27, 0.0  ;;  %v722_v25 = vsel %vm714_vm4, %v718_v22, 0.0  ;;  %vm712_vm12 = vmxor %vm708_vm0, %vm1823_vm1 }
 0x39c   :  { %v725_v5 = vadd.f32 %v722_v25, %v721_v56  ;;  %vm1847_vm8 = vnez %v1810_v63  ;;  %vm771_vm1 = vcmp.eq.s32.totalorder %v981_v13, 1  ;;  %vm777_vm4 = vcmp.eq.s32.totalorder %v981_v13, 3 }
 0x39d   :  { %v695_v15 = vsel %vm1572_vm10, %v687_v38, %v691_v9  ;;  %v696_v34 = vsel %vm1576_vm11, %v688_v29, %v692_v59  ;;  %vm715_vm10 = vmand %vm1847_vm8, %vm1650_vm14 }
 0x39e   :  { %v699_v4 = vmul.f32 0.70710677, %v695_v15  ;;  %v700_v31 = vmul.f32 0.70710677, %v696_v34  ;;  %vm716_vm11 = vmand %vm1517_vm13, %vm712_vm12 }
 0x3a0   :  { %v703_v36 = vsel %vm1847_vm8, %v699_v4, %v1362_v60  ;;  %v704_v11 = vsel %vm1517_vm13, %v700_v31, %v1367_v42  ;;  %vm768_vm13 = vcmp.eq.s32.totalorder %v981_v13, 0 }
 0x3a1   :  { %v719_v43 = vand.u32 2147483647, %v703_v36  ;;  %v720_v39 = vand.u32 2147483647, %v704_v11 }
 0x3a3   :  { %v754_v46 = vsel %vm750_vm2, %v719_v43, 0.0  ;;  %v755_v6 = vsel %vm751_vm15, %v720_v39, 0.0  ;;  %v723_v7 = vsel %vm715_vm10, %v719_v43, 0.0  ;;  %v724_v60 = vsel %vm716_vm11, %v720_v39, 0.0 }
 0x3a4   :  { %v758_v16 = vadd.f32 %v755_v6, %v754_v46  ;;  %v726_v12 = vadd.f32 %v725_v5, %v723_v7 }
 0x3a6   :  { %759 = vadd.xlane.f32.xlu1 %v758_v16  ;;  %v727_v17 = vadd.f32 %v726_v12, %v724_v60 }
 0x3a8   :  { %728 = vadd.xlane.f32.xlu0 %v727_v17 }
 0x3d3   :  { %v300_v42 = vpop.xlane.xlu0 %299 }
 0x3d4   :  { %v301_v18 = vrot.slane %v300_v42, 4 }
 0x3d6   :  { %v302_v21 = vadd.f32 %v301_v18, %v300_v42 }
 0x3d7   :  { %v609_v47 = vpop.xlane.xlu0 %608 }
 0x3d8   :  { %v303_v63 = vrot.slane %v302_v21, 2  ;;  %v610_v3 = vrot.slane %v609_v47, 4  ;;  %v464_v28 = vpop.xlane.xlu1 %463 }
 0x3d9   :  { %v465_v55 = vrot.slane %v464_v28, 4 }
 0x3da   :  { %v611_v10 = vadd.f32 %v610_v3, %v609_v47  ;;  %v304_v20 = vadd.f32 %v303_v63, %v302_v21 }
 0x3db   :  { %v466_v19 = vadd.f32 %v465_v55, %v464_v28 }
 0x3dc   :  { %v612_v57 = vrot.slane %v611_v10, 2  ;;  %v305_v32 = vrot.slane %v304_v20, 1 }
 0x3dd   :  { %v467_v58 = vrot.slane %v466_v19, 2 }
 0x3de   :  { %v306_v35 = vadd.f32 %v305_v32, %v304_v20  ;;  %v613_v40 = vadd.f32 %v612_v57, %v611_v10 }
 0x3df   :  { %v468_v14 = vadd.f32 %v467_v58, %v466_v19 }
 0x3e0   :  { %800 = vpush %v306_v35  ;;  %v614_v41 = vrot.slane %v613_v40, 1 }
 0x3e1   :  { %v469_v44 = vrot.slane %v468_v14, 1 }
 0x3e2   :  { %v615_v52 = vadd.f32 %v614_v41, %v613_v40 }
 0x3e3   :  { %v470_v53 = vadd.f32 %v469_v44, %v468_v14 }
 0x3e5   :  { %802 = vpush %v470_v53 }
 0x3e6   :  { %804 = vpush %v615_v52 }
 0x411   :  { %s801_s17 = spop %800 }
 0x412   :  { %v769_v33 = vstv %s801_s17 }
 0x413   :  { %v770_v22 = vsel %vm768_vm13, %v769_v33, 0.0 }
 0x416   :  { %s803_s18 = spop %802 }
 0x417   :  { %v772_v27 = vstv %s803_s18  ;;  %s805_s19 = spop %804 }
 0x418   :  { %v773_v38 = vsel %vm771_vm1, %v772_v27, %v770_v22  ;;  %v775_v29 = vstv %s805_s19 }
 0x419   :  { %v776_v45 = vsel %vm774_vm9, %v775_v29, %v773_v38 }
 0x433   :  { %v760_v26 = vpop.xlane.xlu1 %759 }
 0x434   :  { %v761_v30 = vrot.slane %v760_v26, 4 }
 0x435   :  { %v729_v8 = vpop.xlane.xlu0 %728 }
 0x436   :  { %v762_v23 = vadd.f32 %v761_v30, %v760_v26  ;;  %v730_v37 = vrot.slane %v729_v8, 4 }
 0x438   :  { %v763_v48 = vrot.slane %v762_v23, 2  ;;  %v731_v49 = vadd.f32 %v730_v37, %v729_v8 }
 0x43a   :  { %v764_v0 = vadd.f32 %v763_v48, %v762_v23  ;;  %v732_v61 = vrot.slane %v731_v49, 2 }
 0x43c   :  { %v733_v50 = vadd.f32 %v732_v61, %v731_v49  ;;  %v765_v51 = vrot.slane %v764_v0, 1 }
 0x43e   :  { %v734_v1 = vrot.slane %v733_v50, 1  ;;  %v766_v54 = vadd.f32 %v765_v51, %v764_v0 }
 0x440   :  { %v735_v2 = vadd.f32 %v734_v1, %v733_v50 }
 0x442   :  { %806 = vpush %v735_v2 }
 0x443   :  { %808 = vpush %v766_v54 }
 0x473   :  { %s807_s22 = spop %806 }
 0x474   :  { %v778_v62 = vstv %s807_s22  ;;  %s809_s23 = spop %808 }
 0x475   :  { %v779_v9 = vsel %vm777_vm4, %v778_v62, %v776_v45  ;;  %v781_v59 = vstv %s809_s23 }
 0x476   :  { %v782_v56 = vsel %vm780_vm7, %v781_v59, %v779_v9 }
 0x477   :  { %783 = vst [vmem:[#allocation7] sm:$0x1] %v782_v56 }
 0x478   :  { %884 = shalt.err (!%p881_p6)
}
 0x479   :  { %s885_s28 = scalar_lea.hbm %s1699_s2, 16 }
 0x47a   :  { %p886_p7 = scmp.ne.s32.totalorder %s1699_s2, %s885_s28  ;;  %p889_p8 = scmp.lt.u32.totalorder %s885_s28, %s1699_s2 }
 0x47c   :  { %p891_p9 = pnand %p889_p8, %p886_p7 }
 0x47e   :  { %894 = shalt.err (!%p891_p9)
}
 0x47f   :  { %793 = dma.vmem_to_hbm [thread:$0]  %s791_s21, 16, %s1699_s2, [#allocation4]  }
 0x480   :  { %899 = dma.done.wait [#allocation4], 16  }
 0x481   :  { %900 = vsyncadd [#allocation4], 4294967280 }
 0x482   :  { %797 = vsyncpa [#allocation3], 1 }
 0x483   :  { %798 = vsyncpa [#allocation6], 1 }
 0x484   :  { %799 = vsyncpa [#allocation4], 1 }

</bundles_post_ra>
